<compile_context>
chip_gen: v7x
topology: tpu7x:2x2x1
jax: 0.10.0
libtpu: 0.0.40
codegen_flags: <defaults>
</compile_context>

<pallas_src>
import functools

import numpy as np
import jax
import jax.numpy as jnp
from jax import lax
from jax.experimental import pallas as pl
from jax.experimental.pallas import tpu as pltpu

EPS = 1e-6
HID = 8  # hidden size of the alignment MLP: Linear(1,8)/ReLU/Linear(8,8)/ReLU/Linear(8,1)/Sigmoid


def _hyp_attn_kernel(q_ref, k_ref, v_ref, mk_ref, o_ref, acc_ref,
                     *, w1, b1, w2, b2, w3, b3):
    f32 = jnp.float32
    dv = v_ref.shape[-1]
    ki = pl.program_id(2)

    @pl.when(ki == 0)
    def _init():
        acc_ref[...] = jnp.zeros_like(acc_ref)

    q = q_ref[...].astype(f32)      # (tq, D)
    k = k_ref[...].astype(f32)      # (tk, D)
    v = v_ref[...].astype(f32)      # (tk, Dv)
    mk = mk_ref[...].astype(f32)    # (tk, 1)

    # --- hyperboloid lift + pairwise Lorentz distance via one augmented matmul ---
    #   -<q_h, k_h>_L = q0*k0 - q.k = [q0, -q] . [k0, k]   (no transpose of k, k0 from k directly)
    q0 = jnp.sqrt(1.0 + jnp.sum(q * q, axis=1, keepdims=True))          # (tq, 1)
    k0 = jnp.sqrt(1.0 + jnp.sum(k * k, axis=1, keepdims=True))          # (tk, 1)
    qa = jnp.concatenate([q0, -q], axis=1)                              # (tq, D+1)
    ka = jnp.concatenate([k0, k], axis=1)                               # (tk, D+1)
    x = lax.dot_general(qa, ka, (((1,), (1,)), ((), ())),
                        preferred_element_type=f32)                     # (tq, tk)
    x = jnp.maximum(x, 1.0)
    d = jnp.log(x + jnp.sqrt((x - 1.0) * (x + 1.0)))                    # arccosh(x)

    # --- alignment MLP applied pointwise on the (tq, tk) distance plane.
    #     Weights are compile-time scalars; keep only the 8 h1 planes + running z live.
    h1 = [jnp.maximum(d * float(w1[j]) + float(b1[j]), 0.0) for j in range(HID)]
    z = jnp.full_like(d, float(b3))
    for i in range(HID):
        s = h1[0] * float(w2[0, i])
        for j in range(1, HID):
            s = s + h1[j] * float(w2[j, i])
        z = z + jnp.maximum(s + float(b2[i]), 0.0) * float(w3[i])

    # alpha = exp(1/(sigmoid(z)+EPS));  1/(sig+EPS) == (1+e)/(1 + EPS*(1+e)) with e = exp(-z)
    one_p_e = 1.0 + jnp.exp(-z)
    alpha = jnp.exp(one_p_e / (1.0 + EPS * one_p_e))                    # (tq, tk)
    # TODO(synk): PyTorch's host-side NaN check + breakpoint() has no kernel equivalent.

    # --- Einstein midpoint with the Klein map eliminated:
    #     gamma * klein(v) == v,  gamma == sqrt(1 + ||v||^2)
    #     (differs from the EPS-clamped reference only when ||v||^2 >= 1/EPS).
    #     mask_k is folded into the value rows (equivalent to masking alpha columns).
    gamma = jnp.sqrt(1.0 + jnp.sum(v * v, axis=1, keepdims=True))       # (tk, 1)
    vg = jnp.concatenate([v, gamma], axis=1) * mk                       # (tk, Dv+1)
    acc_ref[...] += jnp.dot(alpha, vg, preferred_element_type=f32)      # fused num | den

    @pl.when(ki == pl.num_programs(2) - 1)
    def _finalize():
        acc = acc_ref[...]
        num = acc[:, :dv]
        den = acc[:, dv:dv + 1]
        o_ref[...] = (num * pl.reciprocal(den, approx=True)).astype(o_ref.dtype)


def init_alignment_params(key):
    """Deterministic synthetic parameters for the alignment MLP (math orientation: w2 is [in, out])."""
    k1, k2, k3, k4, k5, k6 = jax.random.split(key, 6)
    w1 = 0.3 * jax.random.normal(k1, (HID,), jnp.float32)
    b1 = 0.1 * jax.random.normal(k2, (HID,), jnp.float32)
    w2 = 0.3 * jax.random.normal(k3, (HID, HID), jnp.float32)
    b2 = 0.1 * jax.random.normal(k4, (HID,), jnp.float32)
    w3 = 0.3 * jax.random.normal(k5, (HID,), jnp.float32)
    b3 = 0.1 * jax.random.normal(k6, (), jnp.float32)
    return tuple(np.asarray(p) for p in (w1, b1, w2, b2, w3, b3))


def _pick_tile(n, target):
    """Largest sublane-friendly (multiple-of-8) divisor of n that is <= target, else the full axis."""
    if n <= target:
        return n
    for t in range(target, 0, -1):
        if n % t == 0 and t % 8 == 0:
            return t
    return n


def hyperbolic_attention(q, k, v, params, mask_q=None, mask_k=None,
                         *, tq_target=256, tk_target=512):
    B, Nq, D = q.shape
    _, Nk, Dv = v.shape
    if mask_k is None:
        mask_k = jnp.ones((B, Nk), q.dtype)
    mk = mask_k.reshape(B, Nk, 1).astype(q.dtype)

    tq = _pick_tile(Nq, tq_target)
    tk = _pick_tile(Nk, tk_target)

    w1, b1, w2, b2, w3, b3 = params
    kern = functools.partial(_hyp_attn_kernel, w1=w1, b1=b1, w2=w2, b2=b2, w3=w3, b3=b3)

    # Advisory cost hint: two matmuls + ~90 VALU-equivalent flops/element of MLP, ~4 transcendentals.
    flops = 2 * B * Nq * Nk * ((D + 1) + (Dv + 1)) + 90 * B * Nq * Nk
    transcendentals = 4 * B * Nq * Nk
    bytes_accessed = 4 * (q.size + k.size + v.size + mk.size + B * Nq * Dv)

    out = pl.pallas_call(
        kern,
        out_shape=jax.ShapeDtypeStruct((B, Nq, Dv), q.dtype),
        grid=(B, Nq // tq, Nk // tk),
        in_specs=[
            pl.BlockSpec((None, tq, D), lambda b, qi, ki: (b, qi, 0)),
            pl.BlockSpec((None, tk, D), lambda b, qi, ki: (b, ki, 0)),
            pl.BlockSpec((None, tk, Dv), lambda b, qi, ki: (b, ki, 0)),
            pl.BlockSpec((None, tk, 1), lambda b, qi, ki: (b, ki, 0)),
        ],
        out_specs=pl.BlockSpec((None, tq, Dv), lambda b, qi, ki: (b, qi, 0)),
        scratch_shapes=[pltpu.VMEM((tq, Dv + 1), jnp.float32)],
        compiler_params=pltpu.CompilerParams(
            dimension_semantics=("parallel", "parallel", "arbitrary"),
            vmem_limit_bytes=48 * 1024 * 1024),
        cost_estimate=pl.CostEstimate(flops=flops,
                                      transcendentals=transcendentals,
                                      bytes_accessed=bytes_accessed),
    )(q, k, v, mk)

    if mask_q is not None:
        out = out * mask_q[..., None].astype(out.dtype)   # pure output scaling, applied in the wrapper
    return out


def _reference(q, k, v, params, mask_q=None, mask_k=None):
    """Pure-JAX reference mirroring the PyTorch forward semantics (Klein-map formulation)."""
    w1, b1, w2, b2, w3, b3 = (jnp.asarray(p) for p in params)
    q0 = jnp.sqrt(1.0 + jnp.sum(q * q, -1, keepdims=True))
    k0 = jnp.sqrt(1.0 + jnp.sum(k * k, -1, keepdims=True))
    x = jnp.maximum(q0 * jnp.swapaxes(k0, -1, -2) - jnp.einsum("bqd,bkd->bqk", q, k), 1.0)
    d = jnp.arccosh(x)[..., None]
    h = jax.nn.relu(d * w1 + b1)
    h = jax.nn.relu(h @ w2 + b2)
    z = h @ w3 + b3
    alpha = jnp.exp(1.0 / (jax.nn.sigmoid(z) + EPS))
    if mask_k is not None:
        alpha = alpha * mask_k[..., None, :]
    v_k = v / jnp.sqrt(1.0 + jnp.sum(v * v, -1, keepdims=True))
    gamma = 1.0 / jnp.sqrt(jnp.maximum(1.0 - jnp.sum(v_k * v_k, -1, keepdims=True), EPS))
    att = jnp.einsum("bqk,bkd->bqd", alpha, gamma * v_k) / jnp.einsum("bqk,bkd->bqd", alpha, gamma)
    if mask_q is not None:
        att = att * mask_q[..., None]
    return att


if __name__ == "__main__":
    key = jax.random.PRNGKey(0)
    kq, kk, kv, kp = jax.random.split(key, 4)
    B, Nq, Nk, D, Dv = 2, 16, 24, 16, 16
    q = 0.5 * jax.random.normal(kq, (B, Nq, D), jnp.float32)
    k = 0.5 * jax.random.normal(kk, (B, Nk, D), jnp.float32)
    v = 0.5 * jax.random.normal(kv, (B, Nk, Dv), jnp.float32)
    mask_q = jnp.ones((B, Nq), jnp.float32).at[1, -1].set(0.0)
    mask_k = jnp.ones((B, Nk), jnp.float32).at[0, -2:].set(0.0)
    params = init_alignment_params(kp)

    ref = _reference(q, k, v, params, mask_q, mask_k)

    # Single-tile path (default large tile targets).
    out1 = jax.block_until_ready(hyperbolic_attention(q, k, v, params, mask_q, mask_k))
    # Multi-tile path: force tq=tk=8 to exercise the k-axis accumulation in VMEM scratch.
    out2 = jax.block_until_ready(
        hyperbolic_attention(q, k, v, params, mask_q, mask_k, tq_target=8, tk_target=8))

    for out in (out1, out2):
        assert out.shape == (B, Nq, Dv)
        assert bool(jnp.isfinite(out).all())
        assert bool(jnp.allclose(out, ref, atol=1e-3, rtol=1e-3)), (out, ref)
    print("KERNEL_OK")
</pallas_src>

<mosaic_0001>
module attributes {stable_mosaic.version = 11 : i64} {
  func.func @_hyp_attn_kernel(%arg0: i32, %arg1: i32, %arg2: i32, %arg3: memref<1x16x16xf32, #tpu.memory_space<vmem>>, %arg4: memref<1x24x16xf32, #tpu.memory_space<vmem>>, %arg5: memref<1x24x16xf32, #tpu.memory_space<vmem>>, %arg6: memref<1x24x1xf32, #tpu.memory_space<vmem>>, %arg7: memref<1x16x16xf32, #tpu.memory_space<vmem>>, %arg8: memref<16x17xf32, #tpu.memory_space<vmem>>) attributes {dimension_semantics = [#tpu.dimension_semantics<parallel>, #tpu.dimension_semantics<parallel>, #tpu.dimension_semantics<arbitrary>], iteration_bounds = array<i64: 2, 1, 1>, scalar_prefetch = 0 : i64, scratch_operands = 1 : i64, tpu.core_type = #tpu.core_type<tc>, window_params = [{transform_indices = @transform_0, window_bounds = array<i64: 1, 16, 16>}, {transform_indices = @transform_1, window_bounds = array<i64: 1, 24, 16>}, {transform_indices = @transform_2, window_bounds = array<i64: 1, 24, 16>}, {transform_indices = @transform_3, window_bounds = array<i64: 1, 24, 1>}, {transform_indices = @transform_4, window_bounds = array<i64: 1, 16, 16>}]} {
    %c0_i32 = arith.constant 0 : i32
    %0 = arith.cmpi eq, %arg2, %c0_i32 : i32
    %1 = arith.extui %0 : i1 to i32
    %c0_i32_0 = arith.constant 0 : i32
    %2 = arith.cmpi ne, %1, %c0_i32_0 : i32
    scf.if %2 {
      %cst_146 = arith.constant 0.000000e+00 : f32
      %354 = vector.broadcast %cst_146 : f32 to vector<16x17xf32>
      %c0_147 = arith.constant 0 : index
      %c0_148 = arith.constant 0 : index
      %355 = vector.load %arg8[%c0_147, %c0_148] : memref<16x17xf32, #tpu.memory_space<vmem>>, vector<16x17xf32>
      tpu.vector_store %arg8[%c0_147, %c0_148], %354 {strides = array<i32>} : memref<16x17xf32, #tpu.memory_space<vmem>>, vector<16x17xf32>,
    } else {
    }
    %c0 = arith.constant 0 : index
    %c0_1 = arith.constant 0 : index
    %c0_2 = arith.constant 0 : index
    %3 = vector.load %arg3[%c0, %c0_1, %c0_2] : memref<1x16x16xf32, #tpu.memory_space<vmem>>, vector<1x16x16xf32>
    %4 = vector.shape_cast %3 : vector<1x16x16xf32> to vector<16x16xf32>
    %c0_3 = arith.constant 0 : index
    %c0_4 = arith.constant 0 : index
    %c0_5 = arith.constant 0 : index
    %5 = vector.load %arg4[%c0_3, %c0_4, %c0_5] : memref<1x24x16xf32, #tpu.memory_space<vmem>>, vector<1x24x16xf32>
    %6 = vector.shape_cast %5 : vector<1x24x16xf32> to vector<24x16xf32>
    %c0_6 = arith.constant 0 : index
    %c0_7 = arith.constant 0 : index
    %c0_8 = arith.constant 0 : index
    %7 = vector.load %arg5[%c0_6, %c0_7, %c0_8] : memref<1x24x16xf32, #tpu.memory_space<vmem>>, vector<1x24x16xf32>
    %8 = vector.shape_cast %7 : vector<1x24x16xf32> to vector<24x16xf32>
    %c0_9 = arith.constant 0 : index
    %c0_10 = arith.constant 0 : index
    %c0_11 = arith.constant 0 : index
    %9 = vector.load %arg6[%c0_9, %c0_10, %c0_11] : memref<1x24x1xf32, #tpu.memory_space<vmem>>, vector<1x24x1xf32>
    %10 = vector.shape_cast %9 : vector<1x24x1xf32> to vector<24x1xf32>
    %11 = arith.mulf %4, %4 : vector<16x16xf32>
    %cst = arith.constant dense<0.000000e+00> : vector<16xf32>
    %12 = vector.multi_reduction <add>, %11, %cst [1] : vector<16x16xf32> to vector<16xf32>
    %13 = vector.shape_cast %12 : vector<16xf32> to vector<16x1xf32>
    %cst_12 = arith.constant 1.000000e+00 : f32
    %14 = vector.broadcast %cst_12 : f32 to vector<16x1xf32>
    %15 = arith.addf %14, %13 : vector<16x1xf32>
    %16 = math.sqrt %15 : vector<16x1xf32>
    %17 = arith.mulf %6, %6 : vector<24x16xf32>
    %cst_13 = arith.constant dense<0.000000e+00> : vector<24xf32>
    %18 = vector.multi_reduction <add>, %17, %cst_13 [1] : vector<24x16xf32> to vector<24xf32>
    %19 = vector.shape_cast %18 : vector<24xf32> to vector<24x1xf32>
    %cst_14 = arith.constant 1.000000e+00 : f32
    %20 = vector.broadcast %cst_14 : f32 to vector<24x1xf32>
    %21 = arith.addf %20, %19 : vector<24x1xf32>
    %22 = math.sqrt %21 : vector<24x1xf32>
    %cst_15 = arith.constant 0.000000e+00 : f32
    %23 = vector.broadcast %cst_15 : f32 to vector<16x16xf32>
    %24 = arith.subf %23, %4 : vector<16x16xf32>
    %25 = tpu.concatenate %16, %24 in 1 : vector<16x1xf32>, vector<16x16xf32> -> vector<16x17xf32>
    %26 = tpu.concatenate %22, %6 in 1 : vector<24x1xf32>, vector<24x16xf32> -> vector<24x17xf32>
    %cst_16 = arith.constant dense<0.000000e+00> : vector<16x24xf32>
    %27 = tpu.matmul %25, %26, %cst_16 {dimension_numbers = #tpu.dot_dimension_numbers<[1], [1], [0], [0], [0, 0, 1, 0], [], []>} : vector<16x17xf32>, vector<24x17xf32>, vector<16x24xf32> -> vector<16x24xf32>
    %cst_17 = arith.constant 1.000000e+00 : f32
    %28 = vector.broadcast %cst_17 : f32 to vector<16x24xf32>
    %29 = arith.maximumf %27, %28 : vector<16x24xf32>
    %cst_18 = arith.constant 1.000000e+00 : f32
    %30 = vector.broadcast %cst_18 : f32 to vector<16x24xf32>
    %31 = arith.subf %29, %30 : vector<16x24xf32>
    %cst_19 = arith.constant 1.000000e+00 : f32
    %32 = vector.broadcast %cst_19 : f32 to vector<16x24xf32>
    %33 = arith.addf %29, %32 : vector<16x24xf32>
    %34 = arith.mulf %31, %33 : vector<16x24xf32>
    %35 = math.sqrt %34 : vector<16x24xf32>
    %36 = arith.addf %29, %35 : vector<16x24xf32>
    %37 = math.log %36 : vector<16x24xf32>
    %cst_20 = arith.constant 0.504546523 : f32
    %38 = vector.broadcast %cst_20 : f32 to vector<16x24xf32>
    %39 = arith.mulf %37, %38 : vector<16x24xf32>
    %cst_21 = arith.constant 0.103223287 : f32
    %40 = vector.broadcast %cst_21 : f32 to vector<16x24xf32>
    %41 = arith.addf %39, %40 : vector<16x24xf32>
    %cst_22 = arith.constant 0.000000e+00 : f32
    %42 = vector.broadcast %cst_22 : f32 to vector<16x24xf32>
    %43 = arith.maximumf %41, %42 : vector<16x24xf32>
    %cst_23 = arith.constant 0.199770153 : f32
    %44 = vector.broadcast %cst_23 : f32 to vector<16x24xf32>
    %45 = arith.mulf %37, %44 : vector<16x24xf32>
    %cst_24 = arith.constant 0.0149948867 : f32
    %46 = vector.broadcast %cst_24 : f32 to vector<16x24xf32>
    %47 = arith.addf %45, %46 : vector<16x24xf32>
    %cst_25 = arith.constant 0.000000e+00 : f32
    %48 = vector.broadcast %cst_25 : f32 to vector<16x24xf32>
    %49 = arith.maximumf %47, %48 : vector<16x24xf32>
    %cst_26 = arith.constant -0.0611980036 : f32
    %50 = vector.broadcast %cst_26 : f32 to vector<16x24xf32>
    %51 = arith.mulf %37, %50 : vector<16x24xf32>
    %cst_27 = arith.constant -0.0330182612 : f32
    %52 = vector.broadcast %cst_27 : f32 to vector<16x24xf32>
    %53 = arith.addf %51, %52 : vector<16x24xf32>
    %cst_28 = arith.constant 0.000000e+00 : f32
    %54 = vector.broadcast %cst_28 : f32 to vector<16x24xf32>
    %55 = arith.maximumf %53, %54 : vector<16x24xf32>
    %cst_29 = arith.constant 0.252867579 : f32
    %56 = vector.broadcast %cst_29 : f32 to vector<16x24xf32>
    %57 = arith.mulf %37, %56 : vector<16x24xf32>
    %cst_30 = arith.constant 5.620110e-02 : f32
    %58 = vector.broadcast %cst_30 : f32 to vector<16x24xf32>
    %59 = arith.addf %57, %58 : vector<16x24xf32>
    %cst_31 = arith.constant 0.000000e+00 : f32
    %60 = vector.broadcast %cst_31 : f32 to vector<16x24xf32>
    %61 = arith.maximumf %59, %60 : vector<16x24xf32>
    %cst_32 = arith.constant 0.444320291 : f32
    %62 = vector.broadcast %cst_32 : f32 to vector<16x24xf32>
    %63 = arith.mulf %37, %62 : vector<16x24xf32>
    %cst_33 = arith.constant 5.609280e-02 : f32
    %64 = vector.broadcast %cst_33 : f32 to vector<16x24xf32>
    %65 = arith.addf %63, %64 : vector<16x24xf32>
    %cst_34 = arith.constant 0.000000e+00 : f32
    %66 = vector.broadcast %cst_34 : f32 to vector<16x24xf32>
    %67 = arith.maximumf %65, %66 : vector<16x24xf32>
    %cst_35 = arith.constant 0.561397076 : f32
    %68 = vector.broadcast %cst_35 : f32 to vector<16x24xf32>
    %69 = arith.mulf %37, %68 : vector<16x24xf32>
    %cst_36 = arith.constant 0.086979486 : f32
    %70 = vector.broadcast %cst_36 : f32 to vector<16x24xf32>
    %71 = arith.addf %69, %70 : vector<16x24xf32>
    %cst_37 = arith.constant 0.000000e+00 : f32
    %72 = vector.broadcast %cst_37 : f32 to vector<16x24xf32>
    %73 = arith.maximumf %71, %72 : vector<16x24xf32>
    %cst_38 = arith.constant 0.235559657 : f32
    %74 = vector.broadcast %cst_38 : f32 to vector<16x24xf32>
    %75 = arith.mulf %37, %74 : vector<16x24xf32>
    %cst_39 = arith.constant 0.0877421423 : f32
    %76 = vector.broadcast %cst_39 : f32 to vector<16x24xf32>
    %77 = arith.addf %75, %76 : vector<16x24xf32>
    %cst_40 = arith.constant 0.000000e+00 : f32
    %78 = vector.broadcast %cst_40 : f32 to vector<16x24xf32>
    %79 = arith.maximumf %77, %78 : vector<16x24xf32>
    %cst_41 = arith.constant -0.433703661 : f32
    %80 = vector.broadcast %cst_41 : f32 to vector<16x24xf32>
    %81 = arith.mulf %37, %80 : vector<16x24xf32>
    %cst_42 = arith.constant 0.0515828691 : f32
    %82 = vector.broadcast %cst_42 : f32 to vector<16x24xf32>
    %83 = arith.addf %81, %82 : vector<16x24xf32>
    %cst_43 = arith.constant 0.000000e+00 : f32
    %84 = vector.broadcast %cst_43 : f32 to vector<16x24xf32>
    %85 = arith.maximumf %83, %84 : vector<16x24xf32>
    %cst_44 = arith.constant 2.47790977E-5 : f32
    %86 = vector.broadcast %cst_44 : f32 to vector<16x24xf32>
    %cst_45 = arith.constant 0.437527895 : f32
    %87 = vector.broadcast %cst_45 : f32 to vector<16x24xf32>
    %88 = arith.mulf %43, %87 : vector<16x24xf32>
    %cst_46 = arith.constant -0.156642959 : f32
    %89 = vector.broadcast %cst_46 : f32 to vector<16x24xf32>
    %90 = arith.mulf %49, %89 : vector<16x24xf32>
    %91 = arith.addf %88, %90 : vector<16x24xf32>
    %cst_47 = arith.constant -0.275533676 : f32
    %92 = vector.broadcast %cst_47 : f32 to vector<16x24xf32>
    %93 = arith.mulf %55, %92 : vector<16x24xf32>
    %94 = arith.addf %91, %93 : vector<16x24xf32>
    %cst_48 = arith.constant 0.0674621463 : f32
    %95 = vector.broadcast %cst_48 : f32 to vector<16x24xf32>
    %96 = arith.mulf %61, %95 : vector<16x24xf32>
    %97 = arith.addf %94, %96 : vector<16x24xf32>
    %cst_49 = arith.constant -0.011095684 : f32
    %98 = vector.broadcast %cst_49 : f32 to vector<16x24xf32>
    %99 = arith.mulf %67, %98 : vector<16x24xf32>
    %100 = arith.addf %97, %99 : vector<16x24xf32>
    %cst_50 = arith.constant -0.28197512 : f32
    %101 = vector.broadcast %cst_50 : f32 to vector<16x24xf32>
    %102 = arith.mulf %73, %101 : vector<16x24xf32>
    %103 = arith.addf %100, %102 : vector<16x24xf32>
    %cst_51 = arith.constant 0.342243075 : f32
    %104 = vector.broadcast %cst_51 : f32 to vector<16x24xf32>
    %105 = arith.mulf %79, %104 : vector<16x24xf32>
    %106 = arith.addf %103, %105 : vector<16x24xf32>
    %cst_52 = arith.constant -0.378879458 : f32
    %107 = vector.broadcast %cst_52 : f32 to vector<16x24xf32>
    %108 = arith.mulf %85, %107 : vector<16x24xf32>
    %109 = arith.addf %106, %108 : vector<16x24xf32>
    %cst_53 = arith.constant 0.0430819802 : f32
    %110 = vector.broadcast %cst_53 : f32 to vector<16x24xf32>
    %111 = arith.addf %109, %110 : vector<16x24xf32>
    %cst_54 = arith.constant 0.000000e+00 : f32
    %112 = vector.broadcast %cst_54 : f32 to vector<16x24xf32>
    %113 = arith.maximumf %111, %112 : vector<16x24xf32>
    %cst_55 = arith.constant 0.103589743 : f32
    %114 = vector.broadcast %cst_55 : f32 to vector<16x24xf32>
    %115 = arith.mulf %113, %114 : vector<16x24xf32>
    %116 = arith.addf %86, %115 : vector<16x24xf32>
    %cst_56 = arith.constant -0.025839325 : f32
    %117 = vector.broadcast %cst_56 : f32 to vector<16x24xf32>
    %118 = arith.mulf %43, %117 : vector<16x24xf32>
    %cst_57 = arith.constant 0.102603681 : f32
    %119 = vector.broadcast %cst_57 : f32 to vector<16x24xf32>
    %120 = arith.mulf %49, %119 : vector<16x24xf32>
    %121 = arith.addf %118, %120 : vector<16x24xf32>
    %cst_58 = arith.constant -0.309438169 : f32
    %122 = vector.broadcast %cst_58 : f32 to vector<16x24xf32>
    %123 = arith.mulf %55, %122 : vector<16x24xf32>
    %124 = arith.addf %121, %123 : vector<16x24xf32>
    %cst_59 = arith.constant -0.273482561 : f32
    %125 = vector.broadcast %cst_59 : f32 to vector<16x24xf32>
    %126 = arith.mulf %61, %125 : vector<16x24xf32>
    %127 = arith.addf %124, %126 : vector<16x24xf32>
    %cst_60 = arith.constant 0.0736519396 : f32
    %128 = vector.broadcast %cst_60 : f32 to vector<16x24xf32>
    %129 = arith.mulf %67, %128 : vector<16x24xf32>
    %130 = arith.addf %127, %129 : vector<16x24xf32>
    %cst_61 = arith.constant 0.154541984 : f32
    %131 = vector.broadcast %cst_61 : f32 to vector<16x24xf32>
    %132 = arith.mulf %73, %131 : vector<16x24xf32>
    %133 = arith.addf %130, %132 : vector<16x24xf32>
    %cst_62 = arith.constant 0.0804134756 : f32
    %134 = vector.broadcast %cst_62 : f32 to vector<16x24xf32>
    %135 = arith.mulf %79, %134 : vector<16x24xf32>
    %136 = arith.addf %133, %135 : vector<16x24xf32>
    %cst_63 = arith.constant 0.219742939 : f32
    %137 = vector.broadcast %cst_63 : f32 to vector<16x24xf32>
    %138 = arith.mulf %85, %137 : vector<16x24xf32>
    %139 = arith.addf %136, %138 : vector<16x24xf32>
    %cst_64 = arith.constant 0.0637471303 : f32
    %140 = vector.broadcast %cst_64 : f32 to vector<16x24xf32>
    %141 = arith.addf %139, %140 : vector<16x24xf32>
    %cst_65 = arith.constant 0.000000e+00 : f32
    %142 = vector.broadcast %cst_65 : f32 to vector<16x24xf32>
    %143 = arith.maximumf %141, %142 : vector<16x24xf32>
    %cst_66 = arith.constant -0.187452734 : f32
    %144 = vector.broadcast %cst_66 : f32 to vector<16x24xf32>
    %145 = arith.mulf %143, %144 : vector<16x24xf32>
    %146 = arith.addf %116, %145 : vector<16x24xf32>
    %cst_67 = arith.constant 0.462314248 : f32
    %147 = vector.broadcast %cst_67 : f32 to vector<16x24xf32>
    %148 = arith.mulf %43, %147 : vector<16x24xf32>
    %cst_68 = arith.constant 0.208410457 : f32
    %149 = vector.broadcast %cst_68 : f32 to vector<16x24xf32>
    %150 = arith.mulf %49, %149 : vector<16x24xf32>
    %151 = arith.addf %148, %150 : vector<16x24xf32>
    %cst_69 = arith.constant 0.00836937688 : f32
    %152 = vector.broadcast %cst_69 : f32 to vector<16x24xf32>
    %153 = arith.mulf %55, %152 : vector<16x24xf32>
    %154 = arith.addf %151, %153 : vector<16x24xf32>
    %cst_70 = arith.constant -0.011689825 : f32
    %155 = vector.broadcast %cst_70 : f32 to vector<16x24xf32>
    %156 = arith.mulf %61, %155 : vector<16x24xf32>
    %157 = arith.addf %154, %156 : vector<16x24xf32>
    %cst_71 = arith.constant 0.0597135611 : f32
    %158 = vector.broadcast %cst_71 : f32 to vector<16x24xf32>
    %159 = arith.mulf %67, %158 : vector<16x24xf32>
    %160 = arith.addf %157, %159 : vector<16x24xf32>
    %cst_72 = arith.constant -0.663376748 : f32
    %161 = vector.broadcast %cst_72 : f32 to vector<16x24xf32>
    %162 = arith.mulf %73, %161 : vector<16x24xf32>
    %163 = arith.addf %160, %162 : vector<16x24xf32>
    %cst_73 = arith.constant -0.163562432 : f32
    %164 = vector.broadcast %cst_73 : f32 to vector<16x24xf32>
    %165 = arith.mulf %79, %164 : vector<16x24xf32>
    %166 = arith.addf %163, %165 : vector<16x24xf32>
    %cst_74 = arith.constant -0.328723073 : f32
    %167 = vector.broadcast %cst_74 : f32 to vector<16x24xf32>
    %168 = arith.mulf %85, %167 : vector<16x24xf32>
    %169 = arith.addf %166, %168 : vector<16x24xf32>
    %cst_75 = arith.constant -0.0582878366 : f32
    %170 = vector.broadcast %cst_75 : f32 to vector<16x24xf32>
    %171 = arith.addf %169, %170 : vector<16x24xf32>
    %cst_76 = arith.constant 0.000000e+00 : f32
    %172 = vector.broadcast %cst_76 : f32 to vector<16x24xf32>
    %173 = arith.maximumf %171, %172 : vector<16x24xf32>
    %cst_77 = arith.constant -0.268983543 : f32
    %174 = vector.broadcast %cst_77 : f32 to vector<16x24xf32>
    %175 = arith.mulf %173, %174 : vector<16x24xf32>
    %176 = arith.addf %146, %175 : vector<16x24xf32>
    %cst_78 = arith.constant -0.426306576 : f32
    %177 = vector.broadcast %cst_78 : f32 to vector<16x24xf32>
    %178 = arith.mulf %43, %177 : vector<16x24xf32>
    %cst_79 = arith.constant -0.0691310242 : f32
    %179 = vector.broadcast %cst_79 : f32 to vector<16x24xf32>
    %180 = arith.mulf %49, %179 : vector<16x24xf32>
    %181 = arith.addf %178, %180 : vector<16x24xf32>
    %cst_80 = arith.constant -0.108062297 : f32
    %182 = vector.broadcast %cst_80 : f32 to vector<16x24xf32>
    %183 = arith.mulf %55, %182 : vector<16x24xf32>
    %184 = arith.addf %181, %183 : vector<16x24xf32>
    %cst_81 = arith.constant -0.332052529 : f32
    %185 = vector.broadcast %cst_81 : f32 to vector<16x24xf32>
    %186 = arith.mulf %61, %185 : vector<16x24xf32>
    %187 = arith.addf %184, %186 : vector<16x24xf32>
    %cst_82 = arith.constant 0.56971854 : f32
    %188 = vector.broadcast %cst_82 : f32 to vector<16x24xf32>
    %189 = arith.mulf %67, %188 : vector<16x24xf32>
    %190 = arith.addf %187, %189 : vector<16x24xf32>
    %cst_83 = arith.constant -0.0134927221 : f32
    %191 = vector.broadcast %cst_83 : f32 to vector<16x24xf32>
    %192 = arith.mulf %73, %191 : vector<16x24xf32>
    %193 = arith.addf %190, %192 : vector<16x24xf32>
    %cst_84 = arith.constant 0.349425822 : f32
    %194 = vector.broadcast %cst_84 : f32 to vector<16x24xf32>
    %195 = arith.mulf %79, %194 : vector<16x24xf32>
    %196 = arith.addf %193, %195 : vector<16x24xf32>
    %cst_85 = arith.constant -0.0853447616 : f32
    %197 = vector.broadcast %cst_85 : f32 to vector<16x24xf32>
    %198 = arith.mulf %85, %197 : vector<16x24xf32>
    %199 = arith.addf %196, %198 : vector<16x24xf32>
    %cst_86 = arith.constant -0.0575578399 : f32
    %200 = vector.broadcast %cst_86 : f32 to vector<16x24xf32>
    %201 = arith.addf %199, %200 : vector<16x24xf32>
    %cst_87 = arith.constant 0.000000e+00 : f32
    %202 = vector.broadcast %cst_87 : f32 to vector<16x24xf32>
    %203 = arith.maximumf %201, %202 : vector<16x24xf32>
    %cst_88 = arith.constant 0.145854414 : f32
    %204 = vector.broadcast %cst_88 : f32 to vector<16x24xf32>
    %205 = arith.mulf %203, %204 : vector<16x24xf32>
    %206 = arith.addf %176, %205 : vector<16x24xf32>
    %cst_89 = arith.constant -0.159804568 : f32
    %207 = vector.broadcast %cst_89 : f32 to vector<16x24xf32>
    %208 = arith.mulf %43, %207 : vector<16x24xf32>
    %cst_90 = arith.constant 0.187834546 : f32
    %209 = vector.broadcast %cst_90 : f32 to vector<16x24xf32>
    %210 = arith.mulf %49, %209 : vector<16x24xf32>
    %211 = arith.addf %208, %210 : vector<16x24xf32>
    %cst_91 = arith.constant -0.253147691 : f32
    %212 = vector.broadcast %cst_91 : f32 to vector<16x24xf32>
    %213 = arith.mulf %55, %212 : vector<16x24xf32>
    %214 = arith.addf %211, %213 : vector<16x24xf32>
    %cst_92 = arith.constant -0.18270424 : f32
    %215 = vector.broadcast %cst_92 : f32 to vector<16x24xf32>
    %216 = arith.mulf %61, %215 : vector<16x24xf32>
    %217 = arith.addf %214, %216 : vector<16x24xf32>
    %cst_93 = arith.constant -0.167015165 : f32
    %218 = vector.broadcast %cst_93 : f32 to vector<16x24xf32>
    %219 = arith.mulf %67, %218 : vector<16x24xf32>
    %220 = arith.addf %217, %219 : vector<16x24xf32>
    %cst_94 = arith.constant 0.0534498654 : f32
    %221 = vector.broadcast %cst_94 : f32 to vector<16x24xf32>
    %222 = arith.mulf %73, %221 : vector<16x24xf32>
    %223 = arith.addf %220, %222 : vector<16x24xf32>
    %cst_95 = arith.constant -0.175472751 : f32
    %224 = vector.broadcast %cst_95 : f32 to vector<16x24xf32>
    %225 = arith.mulf %79, %224 : vector<16x24xf32>
    %226 = arith.addf %223, %225 : vector<16x24xf32>
    %cst_96 = arith.constant 0.1455006 : f32
    %227 = vector.broadcast %cst_96 : f32 to vector<16x24xf32>
    %228 = arith.mulf %85, %227 : vector<16x24xf32>
    %229 = arith.addf %226, %228 : vector<16x24xf32>
    %cst_97 = arith.constant 0.0579974949 : f32
    %230 = vector.broadcast %cst_97 : f32 to vector<16x24xf32>
    %231 = arith.addf %229, %230 : vector<16x24xf32>
    %cst_98 = arith.constant 0.000000e+00 : f32
    %232 = vector.broadcast %cst_98 : f32 to vector<16x24xf32>
    %233 = arith.maximumf %231, %232 : vector<16x24xf32>
    %cst_99 = arith.constant 0.136142567 : f32
    %234 = vector.broadcast %cst_99 : f32 to vector<16x24xf32>
    %235 = arith.mulf %233, %234 : vector<16x24xf32>
    %236 = arith.addf %206, %235 : vector<16x24xf32>
    %cst_100 = arith.constant 0.125017226 : f32
    %237 = vector.broadcast %cst_100 : f32 to vector<16x24xf32>
    %238 = arith.mulf %43, %237 : vector<16x24xf32>
    %cst_101 = arith.constant -0.0310901161 : f32
    %239 = vector.broadcast %cst_101 : f32 to vector<16x24xf32>
    %240 = arith.mulf %49, %239 : vector<16x24xf32>
    %241 = arith.addf %238, %240 : vector<16x24xf32>
    %cst_102 = arith.constant -0.185538143 : f32
    %242 = vector.broadcast %cst_102 : f32 to vector<16x24xf32>
    %243 = arith.mulf %55, %242 : vector<16x24xf32>
    %244 = arith.addf %241, %243 : vector<16x24xf32>
    %cst_103 = arith.constant -0.213185415 : f32
    %245 = vector.broadcast %cst_103 : f32 to vector<16x24xf32>
    %246 = arith.mulf %61, %245 : vector<16x24xf32>
    %247 = arith.addf %244, %246 : vector<16x24xf32>
    %cst_104 = arith.constant -2.445400e-01 : f32
    %248 = vector.broadcast %cst_104 : f32 to vector<16x24xf32>
    %249 = arith.mulf %67, %248 : vector<16x24xf32>
    %250 = arith.addf %247, %249 : vector<16x24xf32>
    %cst_105 = arith.constant -0.109138891 : f32
    %251 = vector.broadcast %cst_105 : f32 to vector<16x24xf32>
    %252 = arith.mulf %73, %251 : vector<16x24xf32>
    %253 = arith.addf %250, %252 : vector<16x24xf32>
    %cst_106 = arith.constant 0.210931301 : f32
    %254 = vector.broadcast %cst_106 : f32 to vector<16x24xf32>
    %255 = arith.mulf %79, %254 : vector<16x24xf32>
    %256 = arith.addf %253, %255 : vector<16x24xf32>
    %cst_107 = arith.constant -0.133252367 : f32
    %257 = vector.broadcast %cst_107 : f32 to vector<16x24xf32>
    %258 = arith.mulf %85, %257 : vector<16x24xf32>
    %259 = arith.addf %256, %258 : vector<16x24xf32>
    %cst_108 = arith.constant -0.0660330355 : f32
    %260 = vector.broadcast %cst_108 : f32 to vector<16x24xf32>
    %261 = arith.addf %259, %260 : vector<16x24xf32>
    %cst_109 = arith.constant 0.000000e+00 : f32
    %262 = vector.broadcast %cst_109 : f32 to vector<16x24xf32>
    %263 = arith.maximumf %261, %262 : vector<16x24xf32>
    %cst_110 = arith.constant 0.449237347 : f32
    %264 = vector.broadcast %cst_110 : f32 to vector<16x24xf32>
    %265 = arith.mulf %263, %264 : vector<16x24xf32>
    %266 = arith.addf %236, %265 : vector<16x24xf32>
    %cst_111 = arith.constant 6.213610e-01 : f32
    %267 = vector.broadcast %cst_111 : f32 to vector<16x24xf32>
    %268 = arith.mulf %43, %267 : vector<16x24xf32>
    %cst_112 = arith.constant 0.0337143429 : f32
    %269 = vector.broadcast %cst_112 : f32 to vector<16x24xf32>
    %270 = arith.mulf %49, %269 : vector<16x24xf32>
    %271 = arith.addf %268, %270 : vector<16x24xf32>
    %cst_113 = arith.constant 0.178963408 : f32
    %272 = vector.broadcast %cst_113 : f32 to vector<16x24xf32>
    %273 = arith.mulf %55, %272 : vector<16x24xf32>
    %274 = arith.addf %271, %273 : vector<16x24xf32>
    %cst_114 = arith.constant 0.182495326 : f32
    %275 = vector.broadcast %cst_114 : f32 to vector<16x24xf32>
    %276 = arith.mulf %61, %275 : vector<16x24xf32>
    %277 = arith.addf %274, %276 : vector<16x24xf32>
    %cst_115 = arith.constant 0.286369085 : f32
    %278 = vector.broadcast %cst_115 : f32 to vector<16x24xf32>
    %279 = arith.mulf %67, %278 : vector<16x24xf32>
    %280 = arith.addf %277, %279 : vector<16x24xf32>
    %cst_116 = arith.constant -0.129940063 : f32
    %281 = vector.broadcast %cst_116 : f32 to vector<16x24xf32>
    %282 = arith.mulf %73, %281 : vector<16x24xf32>
    %283 = arith.addf %280, %282 : vector<16x24xf32>
    %cst_117 = arith.constant 0.120516852 : f32
    %284 = vector.broadcast %cst_117 : f32 to vector<16x24xf32>
    %285 = arith.mulf %79, %284 : vector<16x24xf32>
    %286 = arith.addf %283, %285 : vector<16x24xf32>
    %cst_118 = arith.constant -0.641310096 : f32
    %287 = vector.broadcast %cst_118 : f32 to vector<16x24xf32>
    %288 = arith.mulf %85, %287 : vector<16x24xf32>
    %289 = arith.addf %286, %288 : vector<16x24xf32>
    %cst_119 = arith.constant -0.00521593215 : f32
    %290 = vector.broadcast %cst_119 : f32 to vector<16x24xf32>
    %291 = arith.addf %289, %290 : vector<16x24xf32>
    %cst_120 = arith.constant 0.000000e+00 : f32
    %292 = vector.broadcast %cst_120 : f32 to vector<16x24xf32>
    %293 = arith.maximumf %291, %292 : vector<16x24xf32>
    %cst_121 = arith.constant -0.0479343869 : f32
    %294 = vector.broadcast %cst_121 : f32 to vector<16x24xf32>
    %295 = arith.mulf %293, %294 : vector<16x24xf32>
    %296 = arith.addf %266, %295 : vector<16x24xf32>
    %cst_122 = arith.constant 0.270875752 : f32
    %297 = vector.broadcast %cst_122 : f32 to vector<16x24xf32>
    %298 = arith.mulf %43, %297 : vector<16x24xf32>
    %cst_123 = arith.constant -0.771954715 : f32
    %299 = vector.broadcast %cst_123 : f32 to vector<16x24xf32>
    %300 = arith.mulf %49, %299 : vector<16x24xf32>
    %301 = arith.addf %298, %300 : vector<16x24xf32>
    %cst_124 = arith.constant -0.564574778 : f32
    %302 = vector.broadcast %cst_124 : f32 to vector<16x24xf32>
    %303 = arith.mulf %55, %302 : vector<16x24xf32>
    %304 = arith.addf %301, %303 : vector<16x24xf32>
    %cst_125 = arith.constant -0.842457294 : f32
    %305 = vector.broadcast %cst_125 : f32 to vector<16x24xf32>
    %306 = arith.mulf %61, %305 : vector<16x24xf32>
    %307 = arith.addf %304, %306 : vector<16x24xf32>
    %cst_126 = arith.constant -0.168581307 : f32
    %308 = vector.broadcast %cst_126 : f32 to vector<16x24xf32>
    %309 = arith.mulf %67, %308 : vector<16x24xf32>
    %310 = arith.addf %307, %309 : vector<16x24xf32>
    %cst_127 = arith.constant -0.183753714 : f32
    %311 = vector.broadcast %cst_127 : f32 to vector<16x24xf32>
    %312 = arith.mulf %73, %311 : vector<16x24xf32>
    %313 = arith.addf %310, %312 : vector<16x24xf32>
    %cst_128 = arith.constant -0.0526200272 : f32
    %314 = vector.broadcast %cst_128 : f32 to vector<16x24xf32>
    %315 = arith.mulf %79, %314 : vector<16x24xf32>
    %316 = arith.addf %313, %315 : vector<16x24xf32>
    %cst_129 = arith.constant 0.387523174 : f32
    %317 = vector.broadcast %cst_129 : f32 to vector<16x24xf32>
    %318 = arith.mulf %85, %317 : vector<16x24xf32>
    %319 = arith.addf %316, %318 : vector<16x24xf32>
    %cst_130 = arith.constant 0.0208005644 : f32
    %320 = vector.broadcast %cst_130 : f32 to vector<16x24xf32>
    %321 = arith.addf %319, %320 : vector<16x24xf32>
    %cst_131 = arith.constant 0.000000e+00 : f32
    %322 = vector.broadcast %cst_131 : f32 to vector<16x24xf32>
    %323 = arith.maximumf %321, %322 : vector<16x24xf32>
    %cst_132 = arith.constant -0.186078638 : f32
    %324 = vector.broadcast %cst_132 : f32 to vector<16x24xf32>
    %325 = arith.mulf %323, %324 : vector<16x24xf32>
    %326 = arith.addf %296, %325 : vector<16x24xf32>
    %cst_133 = arith.constant 0.000000e+00 : f32
    %327 = vector.broadcast %cst_133 : f32 to vector<16x24xf32>
    %328 = arith.subf %327, %326 : vector<16x24xf32>
    %329 = math.exp %328 : vector<16x24xf32>
    %cst_134 = arith.constant 1.000000e+00 : f32
    %330 = vector.broadcast %cst_134 : f32 to vector<16x24xf32>
    %331 = arith.addf %330, %329 : vector<16x24xf32>
    %cst_135 = arith.constant 9.99999997E-7 : f32
    %332 = vector.broadcast %cst_135 : f32 to vector<16x24xf32>
    %333 = arith.mulf %332, %331 : vector<16x24xf32>
    %cst_136 = arith.constant 1.000000e+00 : f32
    %334 = vector.broadcast %cst_136 : f32 to vector<16x24xf32>
    %335 = arith.addf %334, %333 : vector<16x24xf32>
    %336 = arith.divf %331, %335 : vector<16x24xf32>
    %337 = math.exp %336 : vector<16x24xf32>
    %338 = arith.mulf %8, %8 : vector<24x16xf32>
    %cst_137 = arith.constant dense<0.000000e+00> : vector<24xf32>
    %339 = vector.multi_reduction <add>, %338, %cst_137 [1] : vector<24x16xf32> to vector<24xf32>
    %340 = vector.shape_cast %339 : vector<24xf32> to vector<24x1xf32>
    %cst_138 = arith.constant 1.000000e+00 : f32
    %341 = vector.broadcast %cst_138 : f32 to vector<24x1xf32>
    %342 = arith.addf %341, %340 : vector<24x1xf32>
    %343 = math.sqrt %342 : vector<24x1xf32>
    %344 = tpu.concatenate %8, %343 in 1 : vector<24x16xf32>, vector<24x1xf32> -> vector<24x17xf32>
    %345 = vector.broadcast %10 : vector<24x1xf32> to vector<24x17xf32>
    %346 = arith.mulf %344, %345 : vector<24x17xf32>
    %c0_139 = arith.constant 0 : index
    %c0_140 = arith.constant 0 : index
    %347 = vector.load %arg8[%c0_139, %c0_140] : memref<16x17xf32, #tpu.memory_space<vmem>>, vector<16x17xf32>
    %cst_141 = arith.constant dense<0.000000e+00> : vector<16x17xf32>
    %348 = tpu.matmul %337, %346, %cst_141 {dimension_numbers = #tpu.dot_dimension_numbers<[1], [0], [0], [1], [0, 0, 1, 1], [], []>} : vector<16x24xf32>, vector<24x17xf32>, vector<16x17xf32> -> vector<16x17xf32>
    %349 = arith.addf %347, %348 : vector<16x17xf32>
    %c0_142 = arith.constant 0 : index
    %c0_143 = arith.constant 0 : index
    %350 = vector.load %arg8[%c0_142, %c0_143] : memref<16x17xf32, #tpu.memory_space<vmem>>, vector<16x17xf32>
    tpu.vector_store %arg8[%c0_142, %c0_143], %349 {strides = array<i32>} : memref<16x17xf32, #tpu.memory_space<vmem>>, vector<16x17xf32>,
    %c0_i32_144 = arith.constant 0 : i32
    %351 = arith.cmpi eq, %arg2, %c0_i32_144 : i32
    %352 = arith.extui %351 : i1 to i32
    %c0_i32_145 = arith.constant 0 : i32
    %353 = arith.cmpi ne, %352, %c0_i32_145 : i32
    scf.if %353 {
      %c0_146 = arith.constant 0 : index
      %c0_147 = arith.constant 0 : index
      %354 = vector.load %arg8[%c0_146, %c0_147] : memref<16x17xf32, #tpu.memory_space<vmem>>, vector<16x17xf32>
      %355 = vector.extract_strided_slice %354 {offsets = [0, 0], sizes = [16, 16], strides = [1, 1]} : vector<16x17xf32> to vector<16x16xf32>
      %356 = vector.extract_strided_slice %354 {offsets = [0, 16], sizes = [16, 1], strides = [1, 1]} : vector<16x17xf32> to vector<16x1xf32>
      %357 = tpu.reciprocal %356 {approx = true} : vector<16x1xf32> -> vector<16x1xf32>
      %358 = vector.broadcast %357 : vector<16x1xf32> to vector<16x16xf32>
      %359 = arith.mulf %355, %358 : vector<16x16xf32>
      %c0_148 = arith.constant 0 : index
      %c0_149 = arith.constant 0 : index
      %c0_150 = arith.constant 0 : index
      %360 = vector.load %arg7[%c0_148, %c0_149, %c0_150] : memref<1x16x16xf32, #tpu.memory_space<vmem>>, vector<1x16x16xf32>
      %361 = vector.shape_cast %360 : vector<1x16x16xf32> to vector<16x16xf32>
      %362 = vector.shape_cast %359 : vector<16x16xf32> to vector<1x16x16xf32>
      tpu.vector_store %arg7[%c0_148, %c0_149, %c0_150], %362 {strides = array<i32>} : memref<1x16x16xf32, #tpu.memory_space<vmem>>, vector<1x16x16xf32>,
    } else {
    }
    return
  }
  func.func @transform_0(%arg0: i32, %arg1: i32, %arg2: i32) -> (i32, i32, i32) {
    %c0_i32 = arith.constant 0 : i32
    %c0_i32_0 = arith.constant 0 : i32
    return %arg0, %arg1, %c0_i32 : i32, i32, i32
  }
  func.func @transform_1(%arg0: i32, %arg1: i32, %arg2: i32) -> (i32, i32, i32) {
    %c0_i32 = arith.constant 0 : i32
    %c0_i32_0 = arith.constant 0 : i32
    return %arg0, %arg2, %c0_i32 : i32, i32, i32
  }
  func.func @transform_2(%arg0: i32, %arg1: i32, %arg2: i32) -> (i32, i32, i32) {
    %c0_i32 = arith.constant 0 : i32
    %c0_i32_0 = arith.constant 0 : i32
    return %arg0, %arg2, %c0_i32 : i32, i32, i32
  }
  func.func @transform_3(%arg0: i32, %arg1: i32, %arg2: i32) -> (i32, i32, i32) {
    %c0_i32 = arith.constant 0 : i32
    %c0_i32_0 = arith.constant 0 : i32
    return %arg0, %arg2, %c0_i32 : i32, i32, i32
  }
  func.func @transform_4(%arg0: i32, %arg1: i32, %arg2: i32) -> (i32, i32, i32) {
    %c0_i32 = arith.constant 0 : i32
    %c0_i32_0 = arith.constant 0 : i32
    return %arg0, %arg1, %c0_i32 : i32, i32, i32
  }
}

</mosaic_0001>

<bundles_post_ra>
// kernel: tpu_custom_call.1
= control target key start
LH: loop header
LB: loop body
LE: loop exit
PB: predicated region body
PF: predicated region fallthrough
CT: control target
= control target key end

     0   :  { %9 = vsyncpa [#allocation4], 0  ;;  %s1896_s0 = inlined_call_operand.vmem [shape: f32[2,16,16], index: 0, kind: input, shape index: {}]   ;;  %s1897_s1 = inlined_call_operand.vmem [shape: f32[2,24,16], index: 1, kind: input, shape index: {}]   ;;  %s1898_s2 = inlined_call_operand.vmem [shape: f32[2,24,16], index: 2, kind: input, shape index: {}]   ;;  %s1899_s3 = inlined_call_operand.vmem [shape: f32[2,24,1], index: 3, kind: input, shape index: {}]   ;;  %s1900_s4 = inlined_call_operand.hbm [shape: f32[2,16,16], index: 4, kind: output, shape index: {}]  }
   0x1   :  { %11 = vsyncpa [#allocation4 + $0x1], 0  ;;  %s1546_s15 = smov 0   ;;  %s1548_s16 = smov 0  }
   0x2   :  { %s1550_s17 = smov 0   ;;  %s1552_s18 = smov 0  }
   0x3   :  { %s1554_s19 = smov 0   ;;  %s1556_s20 = smov 0  }
   0x4 LB: > { %s1258_s21 = sadd.s32 4294967295, %s1512_s20   ;;  %s1259_s22 = sadd.s32 4294967294, %s1512_s20   ;;  %s1512_s20 = sphi %s1556_s20, %s17_s20   ;;  %s1508_s19 = sphi %s1554_s19, %s1907_s19   ;;  %s1504_s18 = sphi %s1552_s18, %s1906_s18   ;;  %s1500_s17 = sphi %s1550_s17, %s1905_s17   ;;  %s1496_s16 = sphi %s1548_s16, %s1904_s16   ;;  %s1492_s15 = sphi %s1546_s15, %s1903_s15  }
   0x5   : > { %s36_s23 = sadd.s32 1, %s1508_s19  ;;  %s157_s24 = sadd.s32 1, %s1500_s17 }
   0x6   : > { %p38_p0 = scmp.ge.s32.totalorder %s36_s23, 2  ;;  %p167_p1 = scmp.ne.s32.totalorder %s1500_s17, %s1496_s16 }
   0x7   : > { %p168_p2 = scmp.eq.s32.totalorder %s1258_s21, 1  ;;  %p173_p3 = scmp.ne.s32.totalorder %s1496_s16, %s1492_s15 }
   0x8   : > { %s1909_s23 = smov (%p38_p0, %s36_s23), 0  ;;  %p174_p5 = scmp.eq.s32.totalorder %s1259_s22, 1 }
   0x9   : > { %p1586_p4 = por %p168_p2, %p167_p1  ;;  %s152_s26 = ssub.s32 %s1508_s19, %s1909_s23 }
   0xa   : > { %p1262_p6 = scmp.ge.s32.totalorder %s1512_s20, 1  ;;  %p155_p7 = scmp.eq.s32.totalorder %s152_s26, 0 }
   0xb   : > { %p1593_p8 = por %p174_p5, %p173_p3  ;;  %p244_p9 = scmp.lt.s32.totalorder %s1512_s20, 3 }
   0xc   : > { %s1599_s28 = scalar_select %p155_p7, %s1500_s17, %s157_s24  }
   0xd   : > { %p245_p10 = pnand %p1262_p6, %p244_p9 }
   0xe   : > { %p302_p11 = scmp.lt.s32.totalorder (!%p245_p10), %s1504_s18, 1  ;;  %vm362_vm0 = vcmask (!%p245_p10), 130048   ;;  %s1514_s12 = smov (!%p245_p10), 1   ;;  %v1515_v19 = vmov (!%p245_p10), 0   ;;  %vm431_vm2 = vcmask (!%p245_p10), 7168   ;;  %vm346_vm3 = vcmask (!%p245_p10), 138240  }
   0xf   : > { %248 = sbr.rel (%p245_p10) target bundleno = 991 (0x3df), region = 36  ;;  %1391 = vset.pattern.permute.xlu1 (!%p245_p10), %v1515_v19  ;;  %1390 = vset.pattern.permute.xlu0 (!%p245_p10), %v1515_v19  ;;  %vm1314_vm11 = vmpackc.low (!%p245_p10), %vm346_vm3, %vm346_vm3  ;;  %s1284_s7 = sshll.u32 (!%p245_p10), %s1504_s18, 8 }
  0x10   : > { %s1847_s10 = scalar_lea.hbm (!%p245_p10), %s1900_s4, %s1284_s7 }
  0x16   : > { %s303_s29 = scalar_select %p302_p11, %s1504_s18, 1 }
  0x17   : > { %s1518_s18 = smov [#allocation3]  }
  0x18   : > { %s1283_s30 = sshll.u32 %s303_s29, 4  ;;  %s1603_s5 = smul.u32 24, %s303_s29 }
  0x19   : > { %s309_s8 = scalar_lea.vmem %s1896_s0, %s1283_s30  ;;  %s298_s29 = sand.u32 1, %s1496_s16  }
  0x1a   : > { %v349_v0 = vld [vmem:[%s309_s8] sm:$0xff]  ;;  %s319_s11 = scalar_lea.vmem %s1897_s1, %s1603_s5  ;;  %v350_v9 = vld [vmem:[%s309_s8 + $0x8] sm:$0xff]  ;;  %s329_s21 = scalar_lea.vmem %s1898_s2, %s1603_s5 }
  0x1b   : > { %v360_v1 = vmul.f32 %v349_v0, %v349_v0  ;;  %v351_v2 = vld [vmem:[%s319_s11] sm:$0xff]  ;;  %v353_v3 = vld [vmem:[%s319_s11 + $0x10] sm:$0xff]  ;;  %v352_v4 = vld [vmem:[%s319_s11 + $0x8] sm:$0xff]  ;;  %v361_v13 = vmul.f32 %v350_v9, %v350_v9  ;;  %v421_v16 = vsub.f32 0.0, %v349_v0  ;;  %v422_v17 = vsub.f32 0.0, %v350_v9  ;;  %s339_s26 = scalar_lea.vmem %s1899_s3, %s1603_s5  ;;  %s1263_s30 = sshll.u32 %s298_s29, 4 }
  0x1c   : > { %v385_v5 = vmul.f32 %v351_v2, %v351_v2  ;;  %v387_v6 = vmul.f32 %v353_v3, %v353_v3  ;;  %v386_v7 = vmul.f32 %v352_v4, %v352_v4  ;;  %v1385_v15 = vpack.i.bf16 %v352_v4, %v351_v2  ;;  %v1621_v18 = vld [vmem:[%s329_s21 + $0x8] sm:$0xff]  ;;  %v1625_v21 = vld [vmem:[%s329_s21] sm:$0xff]  ;;  %v1627_v22 = vld [vmem:[%s329_s21 + $0x10] sm:$0xff]  ;;  %s300_s5 = scalar_lea.vmem [#allocation3], %s1263_s30  ;;  %s1850_s11 = scalar_lea.sflag [#allocation4], %s298_s29 }
  0x1d   : > { %v363_v8 = vsel %vm362_vm0, %v360_v1, 0.0  ;;  %v366_v14 = vsel %vm362_vm0, %v361_v13, 0.0  ;;  %v941_v20 = vmul.f32 %v1621_v18, %v1621_v18  ;;  %v940_v23 = vmul.f32 %v1625_v21, %v1625_v21  ;;  %v358_v28 = vld [vmem:[%s339_s26 + $0x8] sm:$0xff]  ;;  %v359_v29 = vld [vmem:[%s339_s26 + $0x10] sm:$0xff]  ;;  %v357_v30 = vld [vmem:[%s339_s26] sm:$0xff]  ;;  %s1122_s6 = sshll.u32 %s300_s5, 4  ;;  %s1842_s6 = int_to_ptr.vmem [resolvable:$true] %s1122_s6 }
  0x1e   : > { %364 = vadd.xlane.f32.xlu1 %v363_v8  ;;  %v388_v10 = vsel %vm362_vm0, %v385_v5, 0.0  ;;  %v394_v11 = vsel %vm362_vm0, %v387_v6, 0.0  ;;  %v391_v12 = vsel %vm362_vm0, %v386_v7, 0.0  ;;  %v942_v25 = vmul.f32 %v1627_v22, %v1627_v22  ;;  %s1438_s13 = sshll.u32 %s1518_s18, 4  ;;  %s1439_s13 = int_to_ptr.vmem [resolvable:$false] %s1438_s13 }
  0x1f   : > { %389 = vadd.xlane.f32.xlu0 %v388_v10  ;;  %v946_v24 = vsel %vm362_vm0, %v941_v20, 0.0  ;;  %v943_v26 = vsel %vm362_vm0, %v940_v23, 0.0  ;;  %s1440_s14 = scalar_lea.vmem %s1439_s13, 512  ;;  %p1441_p1 = scmp.lt.s32.totalorder %s1842_s6, %s1439_s13 }
  0x20   : > { %v949_v27 = vsel %vm362_vm0, %v942_v25, 0.0 }
  0x22   : > { %395 = vadd.xlane.f32.xlu1 %v394_v11 }
  0x23   : > { %392 = vadd.xlane.f32.xlu0 %v391_v12 }
  0x27   : > { %367 = vadd.xlane.f32.xlu0 %v366_v14 }
  0x33   : > { %1386 = vrot.lane.b32.xlu1 %v1385_v15, %s1514_s12 }
  0x37   : > { %425 = vrot.lane.b32.xlu1 %v421_v16, %s1514_s12 }
  0x3b   : > { %427 = vrot.lane.b32.xlu1 %v422_v17, %s1514_s12 }
  0x3d   : > { %441 = vrot.lane.b32.xlu0 %v353_v3, %s1514_s12  ;;  %s1434_s12 = scalar_lea.vmem %s1842_s6, 256 }
  0x3e   : > { %p1435_p12 = scmp.ne.s32.totalorder %s1842_s6, %s1434_s12  ;;  %p1442_p2 = scmp.lt.s32.totalorder %s1440_s14, %s1434_s12 }
  0x40   : > { %p1436_p13 = pnand %p1435_p12, %p1586_p4  ;;  %p1443_p3 = por %p1442_p2, %p1441_p1 }
  0x42   : > { %p1437_p0 = pneg %p1436_p13 }
  0x44   : > { %p1444_p5 = pnand %p1443_p3, %p1437_p0 }
  0x5c   : > { %947 = vadd.xlane.f32.xlu0 %v946_v24 }
  0x5f   : > { %944 = vadd.xlane.f32.xlu1 %v943_v26 }
  0x60   : > { %950 = vadd.xlane.f32.xlu0 %v949_v27 }
  0x70   : > { %986 = vperm.xlu1 %1391, %v358_v28  }
  0x74   : > { %991 = vperm.xlu1 %1391, %v359_v29  }
  0x76   : > { %981 = vperm.xlu0 %1390, %v357_v30  }
  0xab   : > { %v365_v31 = vpop.xlane.xlu1 %364 }
  0xac   : > { %v369_v32 = vadd.f32 1.0, %v365_v31  ;;  %v390_v33 = vpop.xlane.xlu0 %389 }
  0xad   : > { %v397_v34 = vadd.f32 1.0, %v390_v33 }
  0xae   : > { %1394 = vrsqrt.f32 %v369_v32  ;;  %vm373_vm1 = vcmp.eq.f32.partialorder %v369_v32, inf  ;;  %v376_v43 = vand.u32 2147483648, %v369_v32  ;;  %vm375_vm4 = vcmp.eq.f32.partialorder %v369_v32, 0.0 }
  0xaf   : > { %1396 = vrsqrt.f32 %v397_v34  ;;  %v396_v35 = vpop.xlane.xlu1 %395  ;;  %vm402_vm5 = vcmp.eq.f32.partialorder %v397_v34, inf  ;;  %v405_v55 = vand.u32 2147483648, %v397_v34  ;;  %vm404_vm7 = vcmp.eq.f32.partialorder %v397_v34, 0.0 }
  0xb0   : > { %v399_v36 = vadd.f32 1.0, %v396_v35  ;;  %v393_v37 = vpop.xlane.xlu0 %392 }
  0xb1   : > { %v398_v38 = vadd.f32 1.0, %v393_v37 }
  0xb2   : > { %1398 = vrsqrt.f32 %v399_v36  ;;  %vm416_vm6 = vcmp.eq.f32.partialorder %v399_v36, inf  ;;  %v419_v59 = vand.u32 2147483648, %v399_v36  ;;  %vm418_vm10 = vcmp.eq.f32.partialorder %v399_v36, 0.0 }
  0xb3   : > { %1400 = vrsqrt.f32 %v398_v38  ;;  %v1387_v40 = vpop.permute.xlu1 %1386  ;;  %vm409_vm8 = vcmp.eq.f32.partialorder %v398_v38, inf  ;;  %v412_v61 = vand.u32 2147483648, %v398_v38  ;;  %vm411_vm9 = vcmp.eq.f32.partialorder %v398_v38, 0.0 }
  0xb4   : > { %v368_v39 = vpop.xlane.xlu0 %367  ;;  %v1389_v56 = vunpack.i.h.bf16 %v1387_v40  ;;  %v1388_v57 = vunpack.i.l.bf16 %v1387_v40 }
  0xb5   : > { %v370_v41 = vadd.f32 1.0, %v368_v39 }
  0xb7   : > { %1402 = vrsqrt.f32 %v370_v41  ;;  %v426_v46 = vpop.permute.xlu1 %425  ;;  %vm380_vm12 = vcmp.eq.f32.partialorder %v370_v41, inf  ;;  %v383_v10 = vand.u32 2147483648, %v370_v41  ;;  %vm382_vm13 = vcmp.eq.f32.partialorder %v370_v41, 0.0 }
  0xb8   : > { %v1395_v42 = vpop.eup %1394  ;;  %v442_v4 = vpop.permute.xlu0 %441 }
  0xb9   : > { %v1397_v44 = vpop.eup %1396  ;;  %v372_v45 = vmul.f32 %v1395_v42, %v369_v32 }
  0xba   : > { %v401_v47 = vmul.f32 %v1397_v44, %v397_v34 }
  0xbb   : > { %v374_v48 = vsel %vm373_vm1, %v369_v32, %v372_v45  ;;  %v428_v12 = vpop.permute.xlu1 %427 }
  0xbc   : > { %v1399_v49 = vpop.eup %1398  ;;  %v377_v50 = vsel %vm375_vm4, %v376_v43, %v374_v48  ;;  %v403_v51 = vsel %vm402_vm5, %v397_v34, %v401_v47 }
  0xbd   : > { %v1401_v52 = vpop.eup %1400  ;;  %v432_v53 = vsel %vm431_vm2, %v377_v50, %v426_v46  ;;  %v415_v54 = vmul.f32 %v1399_v49, %v399_v36  ;;  %v406_v60 = vsel %vm404_vm7, %v405_v55, %v403_v51 }
  0xbe   : > { %1301 = vmatprep.mubr.msk.f32.mxu0 %vm346_vm3, %v432_v53  ;;  %v408_v58 = vmul.f32 %v1401_v52, %v398_v38  ;;  %v446_v1 = vsel %vm431_vm2, %v406_v60, %v1388_v57 }
  0xbf   : > { %v417_v62 = vsel %vm416_vm6, %v399_v36, %v415_v54 }
  0xc0   : > { %v410_v63 = vsel %vm409_vm8, %v398_v38, %v408_v58  ;;  %v420_v5 = vsel %vm418_vm10, %v419_v59, %v417_v62  ;;  %vm999_vm10 = vcmask 195584  }
  0xc1   : > { %v413_v0 = vsel %vm411_vm9, %v412_v61, %v410_v63  ;;  %v1403_v3 = vpop.eup %1402  ;;  %v448_v7 = vsel %vm431_vm2, %v420_v5, %v442_v4 }
  0xc2   : > { %v447_v2 = vsel %vm431_vm2, %v413_v0, %v1389_v56  ;;  %v379_v8 = vmul.f32 %v1403_v3, %v370_v41 }
  0xc3   : > { %v1313_v6 = vpack.c.bf16 %v447_v2, %v446_v1 }
  0xc4   : > { %v381_v9 = vsel %vm380_vm12, %v370_v41, %v379_v8 }
  0xc5   : > { %1315 = vmatprep.subr.msk.bf16.mxu0 %vm1314_vm11, %v1313_v6  ;;  %v384_v11 = vsel %vm382_vm13, %v383_v10, %v381_v9 }
  0xc6   : > { %1318 = vmatpush3.bf16.xpose.msk.msra.mxu0 %vm1314_vm11, %v1313_v6  ;;  %v433_v13 = vsel %vm431_vm2, %v384_v11, %v428_v12 }
  0xc7   : > { %1299 = vmatprep.subr.msk.mxu0 %vm346_vm3, %v448_v7 }
  0xce   : > { %1300 = vmatpush3.xpose.msk.msra.mxu0 %vm346_vm3, %v448_v7 }
  0xd1   : > { %1302 = vmatmul.mubr.msk.f32.vlgmr.msra.gmra.mrb[0].mxu0 %vm346_vm3, %v433_v13 }
  0xe9   : > { %v948_v14 = vpop.xlane.xlu0 %947 }
  0xea   : > { %v953_v16 = vadd.f32 1.0, %v948_v14 }
  0xec   : > { %v945_v15 = vpop.xlane.xlu1 %944  ;;  %1404 = vrsqrt.f32 %v953_v16  ;;  %vm964_vm14 = vcmp.eq.f32.partialorder %v953_v16, inf  ;;  %v967_v24 = vand.u32 2147483648, %v953_v16  ;;  %vm966_vm1 = vcmp.eq.f32.partialorder %v953_v16, 0.0 }
  0xed   : > { %v952_v17 = vadd.f32 1.0, %v945_v15  ;;  %v951_v19 = vpop.xlane.xlu0 %950 }
  0xee   : > { %v954_v20 = vadd.f32 1.0, %v951_v19 }
  0xef   : > { %1406 = vrsqrt.f32 %v952_v17  ;;  %vm957_vm15 = vcmp.eq.f32.partialorder %v952_v17, inf  ;;  %v960_v26 = vand.u32 2147483648, %v952_v17  ;;  %vm959_vm2 = vcmp.eq.f32.partialorder %v952_v17, 0.0 }
  0xf0   : > { %1408 = vrsqrt.f32 %v954_v20  ;;  %v987_v30 = vpop.permute.xlu1 %986  ;;  %vm971_vm4 = vcmp.eq.f32.partialorder %v954_v20, inf  ;;  %v974_v35 = vand.u32 2147483648, %v954_v20  ;;  %vm973_vm5 = vcmp.eq.f32.partialorder %v954_v20, 0.0 }
  0xf4   : > { %v992_v43 = vpop.permute.xlu1 %991 }
  0xf5   : > { %v982_v32 = vpop.permute.xlu0 %981 }
  0xf6   : > { %v1405_v23 = vpop.eup %1404 }
  0xf7   : > { %v963_v27 = vmul.f32 %v1405_v23, %v953_v16 }
  0xf9   : > { %v1407_v25 = vpop.eup %1406  ;;  %v965_v29 = vsel %vm964_vm14, %v953_v16, %v963_v27 }
  0xfa   : > { %v956_v28 = vmul.f32 %v1407_v25, %v952_v17  ;;  %v1409_v31 = vpop.eup %1408  ;;  %v968_v34 = vsel %vm966_vm1, %v967_v24, %v965_v29 }
  0xfb   : > { %v977_v37 = vsel %vm362_vm0, %v1621_v18, %v968_v34  ;;  %v970_v38 = vmul.f32 %v1409_v31, %v954_v20 }
  0xfc   : > { %v958_v33 = vsel %vm957_vm15, %v952_v17, %v956_v28  ;;  %v995_v40 = vmul.f32 %v987_v30, %v977_v37 }
  0xfd   : > { %v961_v36 = vsel %vm959_vm2, %v960_v26, %v958_v33  ;;  %v972_v42 = vsel %vm971_vm4, %v954_v20, %v970_v38 }
  0xfe   : > { %v976_v39 = vsel %vm362_vm0, %v1625_v21, %v961_v36  ;;  %v975_v44 = vsel %vm973_vm5, %v974_v35, %v972_v42 }
  0xff   : > { %v994_v41 = vmul.f32 %v982_v32, %v976_v39  ;;  %v978_v46 = vsel %vm362_vm0, %v1627_v22, %v975_v44 }
 0x100   : > { %v996_v47 = vmul.f32 %v992_v43, %v978_v46 }
 0x101   : > { %v1319_v45 = vpack.c.bf16 %v995_v40, %v994_v41 }
 0x103   : > { %1320 = vmatprep.subr.bf16.mxu1 %v1319_v45 }
 0x104   : > { %1322 = vmatpush3.bf16.msra.mxu1 %v1319_v45 }
 0x105   : > { %1308 = vmatprep.subr.mxu1 %v996_v47 }
 0x108   : > { %1309 = vmatpush3.msra.mxu1 %v996_v47 }
 0x1a4   : > { %v1303_v18 = vpop.f32.mrb[0].mxu0 }
 0x1a5   : > { %v541_v48 = vmax.f32 %v1303_v18, 1.0  ;;  %v531_v49 = vpop.f32.mrb[1].mxu0 }
 0x1a6   : > { %v540_v50 = vmax.f32 %v531_v49, 1.0 }
 0x1a7   : > { %v1275_v51 = vadd.f32 -1.0, %v541_v48  ;;  %v545_v21 = vadd.f32 1.0, %v541_v48 }
 0x1a8   : > { %v1274_v52 = vadd.f32 -1.0, %v540_v50  ;;  %v544_v53 = vadd.f32 1.0, %v540_v50 }
 0x1a9   : > { %v547_v54 = vmul.f32 %v1275_v51, %v545_v21 }
 0x1aa   : > { %v546_v55 = vmul.f32 %v1274_v52, %v544_v53 }
 0x1ab   : > { %1410 = vrsqrt.f32 %v547_v54  ;;  %vm557_vm6 = vcmp.eq.f32.partialorder %v547_v54, inf  ;;  %v560_v58 = vand.u32 2147483648, %v547_v54  ;;  %vm559_vm7 = vcmp.eq.f32.partialorder %v547_v54, 0.0 }
 0x1ac   : > { %1412 = vrsqrt.f32 %v546_v55  ;;  %vm550_vm8 = vcmp.eq.f32.partialorder %v546_v55, inf  ;;  %v553_v61 = vand.u32 2147483648, %v546_v55  ;;  %vm552_vm9 = vcmp.eq.f32.partialorder %v546_v55, 0.0 }
 0x1b5   : > { %v1411_v56 = vpop.eup %1410 }
 0x1b6   : > { %v1413_v57 = vpop.eup %1412  ;;  %v556_v22 = vmul.f32 %v1411_v56, %v547_v54 }
 0x1b7   : > { %v549_v59 = vmul.f32 %v1413_v57, %v546_v55 }
 0x1b8   : > { %v558_v60 = vsel %vm557_vm6, %v547_v54, %v556_v22 }
 0x1b9   : > { %v561_v62 = vsel %vm559_vm7, %v560_v58, %v558_v60  ;;  %v551_v63 = vsel %vm550_vm8, %v546_v55, %v549_v59 }
 0x1ba   : > { %v563_v0 = vadd.f32 %v561_v62, %v541_v48  ;;  %v554_v1 = vsel %vm552_vm9, %v553_v61, %v551_v63 }
 0x1bb   : > { %v562_v2 = vadd.f32 %v554_v1, %v540_v50 }
 0x1bc   : > { %1414 = vlog2.f32 %v563_v0 }
 0x1bd   : > { %1416 = vlog2.f32 %v562_v2 }
 0x1c6   : > { %v1415_v3 = vpop.eup %1414 }
 0x1c7   : > { %v567_v4 = vmul.f32 0.6931472, %v1415_v3  ;;  %v1417_v11 = vpop.eup %1416 }
 0x1c8   : > { %v565_v28 = vmul.f32 0.6931472, %v1417_v11 }
 0x1c9   : > { %v569_v5 = vmul.f32 0.5045465, %v567_v4  ;;  %v575_v6 = vmul.f32 0.19977015, %v567_v4  ;;  %v581_v7 = vmul.f32 -0.061198004, %v567_v4 }
 0x1ca   : > { %v587_v8 = vmul.f32 0.25286758, %v567_v4  ;;  %v593_v9 = vmul.f32 0.4443203, %v567_v4  ;;  %v599_v10 = vmul.f32 0.5613971, %v567_v4 }
 0x1cb   : > { %v571_v12 = vadd.f32 0.10322329, %v569_v5  ;;  %v577_v13 = vadd.f32 0.014994887, %v575_v6  ;;  %v583_v14 = vadd.f32 -0.03301826, %v581_v7 }
 0x1cc   : > { %v589_v15 = vadd.f32 0.0562011, %v587_v8  ;;  %v595_v16 = vadd.f32 0.0560928, %v593_v9  ;;  %v601_v17 = vadd.f32 0.086979486, %v599_v10 }
 0x1cd   : > { %v1657_v19 = vmax.f32 %v571_v12, 0.0  ;;  %v1659_v20 = vmax.f32 %v577_v13, 0.0  ;;  %v1661_v23 = vmax.f32 %v583_v14, 0.0  ;;  %v605_v24 = vmul.f32 0.23555966, %v567_v4 }
 0x1ce   : > { %v1663_v25 = vmax.f32 %v589_v15, 0.0  ;;  %v1665_v26 = vmax.f32 %v595_v16, 0.0  ;;  %v611_v27 = vmul.f32 -0.43370366, %v567_v4  ;;  %v1669_v32 = vmax.f32 %v601_v17, 0.0 }
 0x1cf   : > { %v607_v29 = vadd.f32 0.08774214, %v605_v24  ;;  %v617_v30 = vmul.f32 0.4375279, %v1657_v19  ;;  %v619_v31 = vmul.f32 -0.15664296, %v1659_v20 }
 0x1d0   : > { %v613_v33 = vadd.f32 0.05158287, %v611_v27  ;;  %v623_v34 = vmul.f32 -0.27553368, %v1661_v23  ;;  %v627_v36 = vmul.f32 0.06746215, %v1663_v25 }
 0x1d1   : > { %v621_v35 = vadd.f32 %v619_v31, %v617_v30  ;;  %v631_v37 = vmul.f32 -0.011095684, %v1665_v26  ;;  %v655_v38 = vmul.f32 -0.025839325, %v1657_v19  ;;  %v1675_v39 = vmax.f32 %v607_v29, 0.0 }
 0x1d2   : > { %v1677_v40 = vmax.f32 %v613_v33, 0.0  ;;  %v657_v41 = vmul.f32 0.10260368, %v1659_v20  ;;  %v661_v42 = vmul.f32 -0.30943817, %v1661_v23 }
 0x1d3   : > { %v625_v43 = vadd.f32 %v623_v34, %v621_v35  ;;  %v665_v44 = vmul.f32 -0.27348256, %v1663_v25  ;;  %v669_v45 = vmul.f32 0.07365194, %v1665_v26  ;;  %v693_v46 = vmul.f32 0.46231425, %v1657_v19 }
 0x1d4   : > { %v659_v47 = vadd.f32 %v657_v41, %v655_v38  ;;  %v695_v18 = vmul.f32 0.20841046, %v1659_v20  ;;  %v699_v48 = vmul.f32 0.008369377, %v1661_v23  ;;  %v703_v49 = vmul.f32 -0.011689825, %v1663_v25 }
 0x1d5   : > { %v731_v50 = vmul.f32 -0.42630658, %v1657_v19  ;;  %v733_v51 = vmul.f32 -0.069131024, %v1659_v20  ;;  %v737_v21 = vmul.f32 -0.1080623, %v1661_v23  ;;  %v629_v61 = vadd.f32 %v627_v36, %v625_v43 }
 0x1d6   : > { %v663_v52 = vadd.f32 %v661_v42, %v659_v47  ;;  %v697_v53 = vadd.f32 %v695_v18, %v693_v46  ;;  %v1691_v54 = vmul.f32 -0.15980457, %v1657_v19  ;;  %v1694_v55 = vmul.f32 0.18783455, %v1659_v20 }
 0x1d7   : > { %v568_v56 = vmul.f32 0.5045465, %v565_v28  ;;  %v574_v57 = vmul.f32 0.19977015, %v565_v28  ;;  %v580_v22 = vmul.f32 -0.061198004, %v565_v28  ;;  %v1710_v24 = vadd.f32 %v631_v37, %v629_v61 }
 0x1d8   : > { %v586_v58 = vmul.f32 0.25286758, %v565_v28  ;;  %v592_v59 = vmul.f32 0.4443203, %v565_v28  ;;  %v598_v60 = vmul.f32 0.5613971, %v565_v28  ;;  %v667_v1 = vadd.f32 %v665_v44, %v663_v52 }
 0x1d9   : > { %v570_v62 = vadd.f32 0.10322329, %v568_v56  ;;  %v576_v63 = vadd.f32 0.014994887, %v574_v57  ;;  %v582_v0 = vadd.f32 -0.03301826, %v580_v22  ;;  %v701_v5 = vadd.f32 %v699_v48, %v697_v53 }
 0x1da   : > { %v588_v2 = vadd.f32 0.0562011, %v586_v58  ;;  %v594_v3 = vadd.f32 0.0560928, %v592_v59  ;;  %v600_v4 = vadd.f32 0.086979486, %v598_v60  ;;  %v1712_v27 = vadd.f32 %v669_v45, %v667_v1 }
 0x1db   : > { %v1696_v6 = vmax.f32 %v570_v62, 0.0  ;;  %v1698_v7 = vmax.f32 %v576_v63, 0.0  ;;  %v1700_v8 = vmax.f32 %v582_v0, 0.0  ;;  %v604_v9 = vmul.f32 0.23555966, %v565_v28 }
 0x1dc   : > { %v1702_v10 = vmax.f32 %v588_v2, 0.0  ;;  %v1704_v11 = vmax.f32 %v594_v3, 0.0  ;;  %v1706_v12 = vmax.f32 %v600_v4, 0.0  ;;  %v610_v13 = vmul.f32 -0.43370366, %v565_v28 }
 0x1dd   : > { %v606_v14 = vadd.f32 0.08774214, %v604_v9  ;;  %v616_v15 = vmul.f32 0.4375279, %v1696_v6  ;;  %v618_v16 = vmul.f32 -0.15664296, %v1698_v7  ;;  %v735_v29 = vadd.f32 %v733_v51, %v731_v50 }
 0x1de   : > { %v612_v17 = vadd.f32 0.05158287, %v610_v13  ;;  %v622_v33 = vmul.f32 -0.27553368, %v1700_v8  ;;  %v626_v34 = vmul.f32 0.06746215, %v1702_v10  ;;  %v1722_v38 = vadd.f32 %v703_v49, %v701_v5 }
 0x1df   : > { %v1714_v30 = vmax.f32 %v606_v14, 0.0  ;;  %v620_v31 = vadd.f32 %v618_v16, %v616_v15  ;;  %v654_v28 = vmul.f32 -0.025839325, %v1696_v6  ;;  %v656_v36 = vmul.f32 0.10260368, %v1698_v7 }
 0x1e0   : > { %v1718_v35 = vmax.f32 %v612_v17, 0.0  ;;  %v630_v41 = vmul.f32 -0.011095684, %v1704_v11  ;;  %v634_v42 = vmul.f32 -0.28197512, %v1706_v12  ;;  %v1726_v43 = vadd.f32 %v737_v21, %v735_v29 }
 0x1e1   : > { %v624_v37 = vadd.f32 %v622_v33, %v620_v31  ;;  %v638_v44 = vmul.f32 0.34224308, %v1714_v30  ;;  %v658_v45 = vadd.f32 %v656_v36, %v654_v28  ;;  %v660_v46 = vmul.f32 -0.30943817, %v1700_v8 }
 0x1e2   : > { %v664_v47 = vmul.f32 -0.27348256, %v1702_v10  ;;  %v642_v48 = vmul.f32 -0.37887946, %v1718_v35  ;;  %v668_v49 = vmul.f32 0.07365194, %v1704_v11 }
 0x1e3   : > { %v628_v18 = vadd.f32 %v626_v34, %v624_v37  ;;  %v692_v50 = vmul.f32 0.46231425, %v1696_v6  ;;  %v662_v51 = vadd.f32 %v660_v46, %v658_v45  ;;  %v672_v52 = vmul.f32 0.15454198, %v1706_v12 }
 0x1e4   : > { %v676_v21 = vmul.f32 0.080413476, %v1714_v30  ;;  %v694_v53 = vmul.f32 0.20841046, %v1698_v7  ;;  %v680_v57 = vmul.f32 0.21974294, %v1718_v35 }
 0x1e5   : > { %v632_v56 = vadd.f32 %v630_v41, %v628_v18  ;;  %v698_v22 = vmul.f32 0.008369377, %v1700_v8  ;;  %v702_v58 = vmul.f32 -0.011689825, %v1702_v10  ;;  %v666_v59 = vadd.f32 %v664_v47, %v662_v51 }
 0x1e6   : > { %v696_v60 = vadd.f32 %v694_v53, %v692_v50  ;;  %v706_v61 = vmul.f32 0.05971356, %v1704_v11  ;;  %v730_v62 = vmul.f32 -0.42630658, %v1696_v6  ;;  %v710_v0 = vmul.f32 -0.66337675, %v1706_v12 }
 0x1e7   : > { %v636_v63 = vadd.f32 %v634_v42, %v632_v56  ;;  %v714_v1 = vmul.f32 -0.16356243, %v1714_v30  ;;  %v732_v2 = vmul.f32 -0.069131024, %v1698_v7  ;;  %v670_v3 = vadd.f32 %v668_v49, %v666_v59 }
 0x1e8   : > { %v700_v4 = vadd.f32 %v698_v22, %v696_v60  ;;  %v718_v5 = vmul.f32 -0.32872307, %v1718_v35  ;;  %v736_v9 = vmul.f32 -0.1080623, %v1700_v8  ;;  %v740_v15 = vmul.f32 -0.33205253, %v1702_v10 }
 0x1e9   : > { %v640_v13 = vadd.f32 %v638_v44, %v636_v63  ;;  %v734_v14 = vadd.f32 %v732_v2, %v730_v62  ;;  %v744_v16 = vmul.f32 0.56971854, %v1704_v11  ;;  %v674_v17 = vadd.f32 %v672_v52, %v670_v3 }
 0x1ea   : > { %v704_v29 = vadd.f32 %v702_v58, %v700_v4  ;;  %v768_v31 = vmul.f32 -0.15980457, %v1696_v6  ;;  %v770_v33 = vmul.f32 0.18783455, %v1698_v7  ;;  %v748_v36 = vmul.f32 -0.013492722, %v1706_v12 }
 0x1eb   : > { %v644_v34 = vadd.f32 %v642_v48, %v640_v13  ;;  %v738_v28 = vadd.f32 %v736_v9, %v734_v14  ;;  %v752_v37 = vmul.f32 0.34942582, %v1714_v30  ;;  %v678_v41 = vadd.f32 %v676_v21, %v674_v17 }
 0x1ec   : > { %v708_v42 = vadd.f32 %v706_v61, %v704_v29  ;;  %v772_v44 = vadd.f32 %v770_v33, %v768_v31  ;;  %v774_v45 = vmul.f32 -0.2531477, %v1700_v8  ;;  %v756_v18 = vmul.f32 -0.08534476, %v1718_v35 }
 0x1ed   : > { %v646_v46 = vadd.f32 0.04308198, %v644_v34  ;;  %v742_v47 = vadd.f32 %v740_v15, %v738_v28  ;;  %v778_v49 = vmul.f32 -0.18270424, %v1702_v10  ;;  %v682_v50 = vadd.f32 %v680_v57, %v678_v41 }
 0x1ee   : > { %v712_v51 = vadd.f32 %v710_v0, %v708_v42  ;;  %v776_v52 = vadd.f32 %v774_v45, %v772_v44  ;;  %v782_v48 = vmul.f32 -0.16701517, %v1704_v11  ;;  %v806_v22 = vmul.f32 0.12501723, %v1696_v6 }
 0x1ef   : > { %v648_v53 = vmax.f32 %v646_v46, 0.0  ;;  %v746_v56 = vadd.f32 %v744_v16, %v742_v47  ;;  %v808_v21 = vmul.f32 -0.031090116, %v1698_v7  ;;  %v684_v58 = vadd.f32 0.06374713, %v682_v50 }
 0x1f0   : > { %v716_v59 = vadd.f32 %v714_v1, %v712_v51  ;;  %v780_v60 = vadd.f32 %v778_v49, %v776_v52  ;;  %v786_v61 = vmul.f32 0.053449865, %v1706_v12  ;;  %v812_v57 = vmul.f32 -0.18553814, %v1700_v8 }
 0x1f1   : > { %v650_v62 = vmul.f32 0.10358974, %v648_v53  ;;  %v750_v63 = vadd.f32 %v748_v36, %v746_v56  ;;  %v810_v2 = vadd.f32 %v808_v21, %v806_v22  ;;  %v686_v0 = vmax.f32 %v684_v58, 0.0 }
 0x1f2   : > { %v720_v3 = vadd.f32 %v718_v5, %v716_v59  ;;  %v784_v4 = vadd.f32 %v782_v48, %v780_v60  ;;  %v790_v9 = vmul.f32 -0.17547275, %v1714_v30  ;;  %v816_v16 = vmul.f32 -0.21318541, %v1702_v10 }
 0x1f3   : > { %v652_v13 = vadd.f32 2.4779098e-05, %v650_v62  ;;  %v754_v14 = vadd.f32 %v752_v37, %v750_v63  ;;  %v814_v15 = vadd.f32 %v812_v57, %v810_v2  ;;  %v688_v17 = vmul.f32 -0.18745273, %v686_v0 }
 0x1f4   : > { %v722_v1 = vadd.f32 -0.058287837, %v720_v3  ;;  %v788_v29 = vadd.f32 %v786_v61, %v784_v4  ;;  %v794_v31 = vmul.f32 0.1455006, %v1718_v35  ;;  %v820_v28 = vmul.f32 -0.24454, %v1704_v11 }
 0x1f5   : > { %v758_v33 = vadd.f32 %v756_v18, %v754_v14  ;;  %v818_v34 = vadd.f32 %v816_v16, %v814_v15  ;;  %v844_v36 = vmul.f32 0.621361, %v1696_v6  ;;  %v690_v5 = vadd.f32 %v688_v17, %v652_v13 }
 0x1f6   : > { %v724_v41 = vmax.f32 %v722_v1, 0.0  ;;  %v792_v42 = vadd.f32 %v790_v9, %v788_v29  ;;  %v846_v44 = vmul.f32 0.033714343, %v1698_v7  ;;  %v824_v46 = vmul.f32 -0.10913889, %v1706_v12 }
 0x1f7   : > { %v760_v37 = vadd.f32 -0.05755784, %v758_v33  ;;  %v822_v45 = vadd.f32 %v820_v28, %v818_v34  ;;  %v828_v47 = vmul.f32 0.2109313, %v1714_v30  ;;  %v850_v18 = vmul.f32 0.17896341, %v1700_v8 }
 0x1f8   : > { %v726_v49 = vmul.f32 -0.26898354, %v724_v41  ;;  %v796_v50 = vadd.f32 %v794_v31, %v792_v42  ;;  %v848_v51 = vadd.f32 %v846_v44, %v844_v36  ;;  %v832_v53 = vmul.f32 -0.13325237, %v1718_v35 }
 0x1f9   : > { %v762_v52 = vmax.f32 %v760_v37, 0.0  ;;  %v826_v48 = vadd.f32 %v824_v46, %v822_v45  ;;  %v854_v56 = vmul.f32 0.18249533, %v1702_v10  ;;  %v858_v59 = vmul.f32 0.2863691, %v1704_v11 }
 0x1fa   : > { %v728_v22 = vadd.f32 %v726_v49, %v690_v5  ;;  %v798_v21 = vadd.f32 0.057997495, %v796_v50  ;;  %v852_v58 = vadd.f32 %v850_v18, %v848_v51  ;;  %v862_v61 = vmul.f32 -0.12994006, %v1706_v12 }
 0x1fb   : > { %v830_v60 = vadd.f32 %v828_v47, %v826_v48  ;;  %v882_v62 = vmul.f32 0.27087575, %v1696_v6  ;;  %v884_v63 = vmul.f32 -0.7719547, %v1698_v7  ;;  %v764_v2 = vmul.f32 0.14585441, %v762_v52 }
 0x1fc   : > { %v800_v57 = vmax.f32 %v798_v21, 0.0  ;;  %v856_v0 = vadd.f32 %v854_v56, %v852_v58  ;;  %v866_v3 = vmul.f32 0.12051685, %v1714_v30  ;;  %v870_v9 = vmul.f32 -0.6413101, %v1718_v35 }
 0x1fd   : > { %v834_v4 = vadd.f32 %v832_v53, %v830_v60  ;;  %v886_v13 = vadd.f32 %v884_v63, %v882_v62  ;;  %v888_v14 = vmul.f32 -0.5645748, %v1700_v8  ;;  %v766_v15 = vadd.f32 %v764_v2, %v728_v22 }
 0x1fe   : > { %v860_v16 = vadd.f32 %v858_v59, %v856_v0  ;;  %v892_v17 = vmul.f32 -0.8424573, %v1702_v10  ;;  %v896_v1 = vmul.f32 -0.1685813, %v1704_v11  ;;  %v802_v6 = vmul.f32 0.13614257, %v800_v57 }
 0x1ff   : > { %v836_v29 = vadd.f32 -0.066033036, %v834_v4  ;;  %v890_v7 = vadd.f32 %v888_v14, %v886_v13  ;;  %v635_v31 = vmul.f32 -0.28197512, %v1669_v32  ;;  %v900_v34 = vmul.f32 -0.18375371, %v1706_v12 }
 0x200   : > { %v864_v33 = vadd.f32 %v862_v61, %v860_v16  ;;  %v904_v28 = vmul.f32 -0.052620027, %v1714_v30  ;;  %v908_v36 = vmul.f32 0.38752317, %v1718_v35  ;;  %v639_v41 = vmul.f32 0.34224308, %v1675_v39 }
 0x201   : > { %v894_v5 = vadd.f32 %v892_v17, %v890_v7  ;;  %v637_v8 = vadd.f32 %v635_v31, %v1710_v24  ;;  %v673_v10 = vmul.f32 0.15454198, %v1669_v32  ;;  %v838_v11 = vmax.f32 %v836_v29, 0.0 }
 0x202   : > { %v868_v42 = vadd.f32 %v866_v3, %v864_v33  ;;  %v643_v44 = vmul.f32 -0.37887946, %v1677_v40  ;;  %v707_v37 = vmul.f32 0.05971356, %v1665_v26  ;;  %v677_v30 = vmul.f32 0.080413476, %v1675_v39 }
 0x203   : > { %v898_v45 = vadd.f32 %v896_v1, %v894_v5  ;;  %v641_v46 = vadd.f32 %v639_v41, %v637_v8  ;;  %v675_v12 = vadd.f32 %v673_v10, %v1712_v27  ;;  %v804_v35 = vadd.f32 %v802_v6, %v766_v15 }
 0x204   : > { %v872_v47 = vadd.f32 %v870_v9, %v868_v42  ;;  %v709_v24 = vadd.f32 %v707_v37, %v1722_v38  ;;  %v711_v49 = vmul.f32 -0.66337675, %v1669_v32  ;;  %v681_v52 = vmul.f32 0.21974294, %v1677_v40 }
 0x205   : > { %v902_v50 = vadd.f32 %v900_v34, %v898_v45  ;;  %v645_v51 = vadd.f32 %v643_v44, %v641_v46  ;;  %v679_v18 = vadd.f32 %v677_v30, %v675_v12  ;;  %v715_v56 = vmul.f32 -0.16356243, %v1675_v39 }
 0x206   : > { %v874_v48 = vadd.f32 -0.005215932, %v872_v47  ;;  %v713_v53 = vadd.f32 %v711_v49, %v709_v24  ;;  %v741_v22 = vmul.f32 -0.33205253, %v1663_v25  ;;  %v840_v27 = vmul.f32 0.44923735, %v838_v11 }
 0x207   : > { %v906_v21 = vadd.f32 %v904_v28, %v902_v50  ;;  %v647_v58 = vadd.f32 0.04308198, %v645_v51  ;;  %v683_v59 = vadd.f32 %v681_v52, %v679_v18  ;;  %v745_v62 = vmul.f32 0.56971854, %v1665_v26 }
 0x208   : > { %v876_v60 = vmax.f32 %v874_v48, 0.0  ;;  %v717_v61 = vadd.f32 %v715_v56, %v713_v53  ;;  %v743_v38 = vadd.f32 %v741_v22, %v1726_v43  ;;  %v842_v63 = vadd.f32 %v840_v27, %v804_v35 }
 0x209   : > { %v910_v2 = vadd.f32 %v908_v36, %v906_v21  ;;  %v649_v57 = vmax.f32 %v647_v58, 0.0  ;;  %v719_v0 = vmul.f32 -0.32872307, %v1677_v40  ;;  %v749_v4 = vmul.f32 -0.013492722, %v1669_v32 }
 0x20a   : > { %v747_v3 = vadd.f32 %v745_v62, %v743_v38  ;;  %v878_v9 = vmul.f32 -0.047934387, %v876_v60  ;;  %v685_v14 = vadd.f32 0.06374713, %v683_v59  ;;  %v773_v15 = vadd.f32 %v1694_v55, %v1691_v54 }
 0x20b   : > { %v912_v13 = vadd.f32 0.020800564, %v910_v2  ;;  %v721_v16 = vadd.f32 %v719_v0, %v717_v61  ;;  %v753_v43 = vmul.f32 0.34942582, %v1675_v39  ;;  %v775_v1 = vmul.f32 -0.2531477, %v1661_v23 }
 0x20c   : > { %v751_v17 = vadd.f32 %v749_v4, %v747_v3  ;;  %v880_v6 = vadd.f32 %v878_v9, %v842_v63  ;;  %v757_v7 = vmul.f32 -0.08534476, %v1677_v40  ;;  %v651_v31 = vmul.f32 0.10358974, %v649_v57 }
 0x20d   : > { %v914_v29 = vmax.f32 %v912_v13, 0.0  ;;  %v777_v34 = vadd.f32 %v775_v1, %v773_v15  ;;  %v779_v28 = vmul.f32 -0.18270424, %v1663_v25  ;;  %v1516_v36 = vmov 0.0  }
 0x20e   : > { %v755_v33 = vadd.f32 %v753_v43, %v751_v17  ;;  %348 = vst.msk [vmem:[#allocation2 + $0x8] sm:$0xff] %vm346_vm3, %v1516_v36  ;;  %347 = vst.msk [vmem:[#allocation2] sm:$0xff] %vm346_vm3, %v1516_v36  ;;  %v687_v55 = vmax.f32 %v685_v14, 0.0  ;;  %v723_v5 = vadd.f32 -0.058287837, %v721_v16 }
 0x20f   : > { %v916_v54 = vmul.f32 -0.18607864, %v914_v29  ;;  %v781_v41 = vadd.f32 %v779_v28, %v777_v34  ;;  %v783_v10 = vmul.f32 -0.16701517, %v1665_v26  ;;  %v807_v42 = vmul.f32 0.12501723, %v1657_v19 }
 0x210   : > { %v759_v8 = vadd.f32 %v757_v7, %v755_v33  ;;  %v809_v44 = vmul.f32 -0.031090116, %v1659_v20  ;;  %v653_v37 = vadd.f32 2.4779098e-05, %v651_v31  ;;  %v787_v46 = vmul.f32 0.053449865, %v1669_v32 }
 0x211   : > { %v918_v11 = vadd.f32 %v916_v54, %v880_v6  ;;  %v785_v45 = vadd.f32 %v783_v10, %v781_v41  ;;  %v689_v30 = vmul.f32 -0.18745273, %v687_v55  ;;  %v813_v47 = vmul.f32 -0.18553814, %v1661_v23 }
 0x212   : > { %v811_v35 = vadd.f32 %v809_v44, %v807_v42  ;;  %v725_v24 = vmax.f32 %v723_v5, 0.0  ;;  %v761_v49 = vadd.f32 -0.05755784, %v759_v8  ;;  %v791_v51 = vmul.f32 -0.17547275, %v1675_v39 }
 0x213   : > { %v920_v12 = vsub.f32 0.0, %v918_v11  ;;  %v789_v50 = vadd.f32 %v787_v46, %v785_v45  ;;  %v817_v48 = vmul.f32 -0.21318541, %v1663_v25  ;;  %v845_v53 = vmul.f32 0.621361, %v1657_v19 }
 0x214   : > { %v815_v52 = vadd.f32 %v813_v47, %v811_v35  ;;  %v795_v22 = vmul.f32 0.1455006, %v1677_v40  ;;  %v847_v27 = vmul.f32 0.033714343, %v1659_v20  ;;  %v691_v21 = vadd.f32 %v689_v30, %v653_v37 }
 0x215   : > { %v922_v18 = vmul.f32 1.442695, %v920_v12  ;;  %v793_v56 = vadd.f32 %v791_v51, %v789_v50  ;;  %v821_v59 = vmul.f32 -0.24454, %v1665_v26  ;;  %v727_v60 = vmul.f32 -0.26898354, %v725_v24 }
 0x216   : > { %v819_v58 = vadd.f32 %v817_v48, %v815_v52  ;;  %v849_v38 = vadd.f32 %v847_v27, %v845_v53  ;;  %v851_v62 = vmul.f32 0.17896341, %v1661_v23  ;;  %v763_v63 = vmax.f32 %v761_v49, 0.0 }
 0x217   : > { %1418 = vpow2.f32 %v922_v18  ;;  %v797_v61 = vadd.f32 %v795_v22, %v793_v56  ;;  %v825_v57 = vmul.f32 -0.10913889, %v1669_v32  ;;  %v883_v0 = vmul.f32 0.27087575, %v1657_v19 }
 0x218   : > { %v823_v2 = vadd.f32 %v821_v59, %v819_v58  ;;  %v853_v4 = vadd.f32 %v851_v62, %v849_v38  ;;  %v855_v9 = vmul.f32 0.18249533, %v1663_v25  ;;  %v885_v13 = vmul.f32 -0.7719547, %v1659_v20 }
 0x219   : > { %v799_v3 = vadd.f32 0.057997495, %v797_v61  ;;  %v729_v14 = vadd.f32 %v727_v60, %v691_v21  ;;  %v829_v16 = vmul.f32 0.2109313, %v1675_v39  ;;  %v859_v43 = vmul.f32 0.2863691, %v1665_v26 }
 0x21a   : > { %v827_v15 = vadd.f32 %v825_v57, %v823_v2  ;;  %v857_v17 = vadd.f32 %v855_v9, %v853_v4  ;;  %v887_v1 = vadd.f32 %v885_v13, %v883_v0  ;;  %v889_v6 = vmul.f32 -0.5645748, %v1661_v23 }
 0x21b   : > { %v765_v29 = vmul.f32 0.14585441, %v763_v63  ;;  %v833_v19 = vmul.f32 -0.13325237, %v1677_v40  ;;  %v863_v31 = vmul.f32 -0.12994006, %v1669_v32 }
 0x21c   : > { %v831_v7 = vadd.f32 %v829_v16, %v827_v15  ;;  %v801_v33 = vmax.f32 %v799_v3, 0.0  ;;  %v861_v34 = vadd.f32 %v859_v43, %v857_v17  ;;  %v891_v28 = vadd.f32 %v889_v6, %v887_v1  ;;  %v997_v15 = vld [vmem:[#allocation2] sm:$0xff] }
 0x21d   : > { %v893_v20 = vmul.f32 -0.8424573, %v1663_v25  ;;  %v767_v36 = vadd.f32 %v765_v29, %v729_v14  ;;  %v867_v5 = vmul.f32 0.12051685, %v1675_v39  ;;  %v897_v41 = vmul.f32 -0.1685813, %v1665_v26 }
 0x21e   : > { %v835_v54 = vadd.f32 %v833_v19, %v831_v7  ;;  %v865_v55 = vadd.f32 %v863_v31, %v861_v34  ;;  %v871_v11 = vmul.f32 -0.6413101, %v1677_v40  ;;  %v901_v42 = vmul.f32 -0.18375371, %v1669_v32  ;;  %v998_v14 = vld [vmem:[#allocation2 + $0x8] sm:$0xff] }
 0x21f   : > { %v895_v8 = vadd.f32 %v893_v20, %v891_v28  ;;  %v803_v37 = vmul.f32 0.13614257, %v801_v33  ;;  %v905_v25 = vmul.f32 -0.052620027, %v1675_v39  ;;  %v909_v49 = vmul.f32 0.38752317, %v1677_v40 }
 0x220   : > { %v837_v10 = vadd.f32 -0.066033036, %v835_v54  ;;  %v869_v45 = vadd.f32 %v867_v5, %v865_v55  ;;  %v1517_v13 = vmov 16  }
 0x221   : > { %v1419_v23 = vpop.eup %1418  ;;  %v899_v46 = vadd.f32 %v897_v41, %v895_v8  ;;  %v805_v35 = vadd.f32 %v803_v37, %v767_v36  ;;  %1392 = vset.pattern.permute.xlu1 %v1517_v13  ;;  %1393 = vset.pattern.permute.xlu0 %v1517_v13 }
 0x222   : > { %v926_v44 = vadd.f32 1.0, %v1419_v23  ;;  %v839_v12 = vmax.f32 %v837_v10, 0.0  ;;  %v873_v47 = vadd.f32 %v871_v11, %v869_v45 }
 0x223   : > { %v903_v24 = vadd.f32 %v901_v42, %v899_v46 }
 0x224   : > { %v928_v30 = vmul.f32 1e-06, %v926_v44  ;;  %v841_v50 = vmul.f32 0.44923735, %v839_v12  ;;  %v875_v51 = vadd.f32 -0.005215932, %v873_v47 }
 0x225   : > { %v907_v18 = vadd.f32 %v905_v25, %v903_v24 }
 0x226   : > { %v930_v26 = vadd.f32 1.0, %v928_v30  ;;  %v843_v52 = vadd.f32 %v841_v50, %v805_v35  ;;  %v877_v32 = vmax.f32 %v875_v51, 0.0 }
 0x227   : > { %v911_v48 = vadd.f32 %v909_v49, %v907_v18 }
 0x228   : > { %1420 = vrcp.f32 %v930_v26  ;;  %v879_v53 = vmul.f32 -0.047934387, %v877_v32 }
 0x229   : > { %v913_v56 = vadd.f32 0.020800564, %v911_v48 }
 0x22a   : > { %v881_v22 = vadd.f32 %v879_v53, %v843_v52 }
 0x22b   : > { %v915_v27 = vmax.f32 %v913_v56, 0.0 }
 0x22d   : > { %v917_v21 = vmul.f32 -0.18607864, %v915_v27 }
 0x22f   : > { %v919_v39 = vadd.f32 %v917_v21, %v881_v22 }
 0x231   : > { %v921_v59 = vsub.f32 0.0, %v919_v39 }
 0x232   : > { %v1421_v58 = vpop.eup %1420 }
 0x233   : > { %v933_v60 = vmul.f32 %v1421_v58, %v926_v44  ;;  %v924_v61 = vmul.f32 1.442695, %v921_v59 }
 0x235   : > { %v936_v38 = vmul.f32 1.442695, %v933_v60  ;;  %1422 = vpow2.f32 %v924_v61 }
 0x237   : > { %1424 = vpow2.f32 %v936_v38 }
 0x23f   : > { %v1423_v40 = vpop.eup %1422 }
 0x240   : > { %v927_v63 = vadd.f32 1.0, %v1423_v40 }
 0x241   : > { %v1425_v62 = vpop.eup %1424 }
 0x242   : > { %1310 = vmatprep.mubr.msk.f32.mxu1 %vm999_vm10, %v1425_v62  ;;  %v929_v2 = vmul.f32 1e-06, %v927_v63 }
 0x244   : > { %v931_v57 = vadd.f32 1.0, %v929_v2 }
 0x246   : > { %1426 = vrcp.f32 %v931_v57 }
 0x250   : > { %v1427_v0 = vpop.eup %1426 }
 0x251   : > { %v935_v3 = vmul.f32 %v1427_v0, %v927_v63 }
 0x253   : > { %v938_v4 = vmul.f32 1.442695, %v935_v3 }
 0x255   : > { %1428 = vpow2.f32 %v938_v4 }
 0x25f   : > { %v1429_v9 = vpop.eup %1428 }
 0x260   : > { %1311 = vmatmul.mubr.msk.f32.vlgmr.msra.gmra.mrb[0].mxu1 %vm999_vm10, %v1429_v9 }
 0x333   : > { %v1312_v16 = vpop.f32.mrb[0].mxu1 }
 0x334   : > { %v1082_v17 = vadd.f32 %v1312_v16, %v998_v14  ;;  %v1072_v43 = vpop.f32.mrb[1].mxu1 }
 0x335   : > { %v1081_v1 = vadd.f32 %v1072_v43, %v997_v15 }
 0x336   : > { %1084 = vst.msk [vmem:[#allocation2 + $0x8] sm:$0xff] %vm346_vm3, %v1082_v17 }
 0x337   : > { %1083 = vst.msk [vmem:[#allocation2] sm:$0xff] %vm346_vm3, %v1081_v1 }
 0x33d   : > { %v1089_v29 = vld [vmem:[#allocation2 + $0x8] sm:$0xff] }
 0x33e   : > { %v1088_v6 = vld [vmem:[#allocation2] sm:$0xff] }
 0x33f   : > { %1430 = vrcp.f32 %v1088_v6 }
 0x340   : > { %1432 = vrcp.f32 %v1089_v29 }
 0x349   : > { %v1431_v7 = vpop.eup %1430 }
 0x34a   : > { %1094 = vperm.xlu1 %1392, %v1431_v7   ;;  %v1433_v19 = vpop.eup %1432 }
 0x34e   : > { %1099 = vperm.xlu1 %1392, %v1433_v19  }
 0x3c9   : > { %v1095_v31 = vpop.permute.xlu1 %1094 }
 0x3ca   : > { %v1102_v33 = vmul.f32 %v1095_v31, %v1088_v6 }
 0x3cc   : > { %1104 = vst.msk [vmem:[%s300_s5] sm:$0xff] %vm362_vm0, %v1102_v33 }
 0x3cd   : > { %v1100_v34 = vpop.permute.xlu1 %1099 }
 0x3ce   : > { %v1103_v28 = vmul.f32 %v1100_v34, %v1089_v29 }
 0x3d0   : > { %1105 = vst.msk [vmem:[%s300_s5 + $0x8] sm:$0xff] %vm362_vm0, %v1103_v28 }
 0x3d1   : > { %1447 = shalt.err (!%p1444_p5)
}
 0x3d2   : > { %s1448_s21 = scalar_lea.hbm %s1847_s10, 256  ;;  %s1452_s26 = scalar_lea.hbm %s1900_s4, 512 }
 0x3d3   : > { %p1449_p6 = scmp.ne.s32.totalorder %s1847_s10, %s1448_s21  ;;  %p1453_p10 = scmp.lt.u32.totalorder %s1847_s10, %s1900_s4 }
 0x3d4   : > { %p1454_p11 = scmp.lt.u32.totalorder %s1452_s26, %s1448_s21  ;;  %p1456_p13 = scmp.lt.u32.totalorder %s1448_s21, %s1847_s10 }
 0x3d5   : > { %p1450_p7 = pnand %p1449_p6, %p1586_p4 }
 0x3d6   : > { %p1455_p12 = por %p1454_p11, %p1453_p10 }
 0x3d7   : > { %p1451_p9 = pneg %p1450_p7 }
 0x3d8   : > { %p1457_p0 = por %p1456_p13, %p1455_p12 }
 0x3da   : > { %p1458_p1 = pnand %p1457_p0, %p1451_p9 }
 0x3dc   : > { %1461 = shalt.err (!%p1458_p1)
}
 0x3dd   : > { %s1519_s5 = smov 128   ;;  %s1520_s7 = smov 8  }
 0x3de   : > { %1324 = dma.vmem_to_hbm [thread:$0]  (%p1586_p4), %s1842_s6, 256, %s1847_s10, %s1850_s11, %s1519_s5, %s1519_s5, %s1520_s7  }
 0x3df PF: > { %p1330_p2 = scmp.ge.s32.totalorder %s1512_s20, 2  ;;  %s1137_s8 = sand.u32 1, %s1492_s15  }
 0x3e0   : > { %s1138_s9 = scalar_lea.sflag [#allocation4], %s1137_s8 }
 0x3e1   : > { %p1327_p3 = pnand %p1330_p2, %p1593_p8 }
 0x3e3   : > { %1487 = dma.done.wait (!%p1327_p3), %s1138_s9, 256  }
 0x3e4   : > { %1489 = vsyncadd (!%p1327_p3), %s1138_s9, 4294967040  ;;  %s17_s20 = sadd.s32 1, %s1512_s20   ;;  %s1903_s15 = smov %s1496_s16 }
 0x3e5   : > { %p14_p5 = scmp.ge.s32.totalorder %s17_s20, 4   ;;  %s1904_s16 = smov %s1500_s17 }
 0x3e6   : > { %s1905_s17 = smov %s1599_s28  ;;  %s1906_s18 = smov %s1508_s19 }
 0x3e7   : > { %s1907_s19 = smov %s1909_s23  ;;  %16 = sbr.rel (!%p14_p5) target bundleno = 4 (0x4), region = 88 }
 0x3ee   :  { %1143 = vsyncpa [#allocation4], 1 }
 0x3ef   :  { %1145 = vsyncpa [#allocation4 + $0x1], 1 }

</bundles_post_ra>
